<compile_context>
chip_gen: v7x
topology: tpu7x:2x2x1
jax: 0.10.0
libtpu: 0.0.40
codegen_flags: <defaults>
</compile_context>

<pallas_src>
import functools

import jax
import jax.numpy as jnp
from jax.experimental import pallas as pl
from jax.experimental.pallas import tpu as pltpu

# ---------------- model config (ViT-Large scaled down) ----------------------
IMG = 32            # 224 in the real model
PATCH = 8           # 16  in the real model
IN_CH = 3
EMBED = 128         # 1024 in the real model
DEPTH = 2           # 24   in the real model
HEADS = 4           # 16   in the real model
HEAD_DIM = EMBED // HEADS
MLP_HIDDEN = 4 * EMBED
GRID = IMG // PATCH
NUM_PATCHES = GRID * GRID
LN_EPS = 1e-6

_PARALLEL = pltpu.CompilerParams(dimension_semantics=("parallel",))


def _row_tile(m, target=256):
    """Largest row tile <= target that divides m (m is kept a multiple of 8)."""
    for t in (target, 128, 64, 32, 16, 8):
        if t <= m and m % t == 0:
            return t
    return m


def _ln_f32(x, g, b, eps):
    mean = jnp.mean(x, axis=-1, keepdims=True)
    var = jnp.mean(jnp.square(x - mean), axis=-1, keepdims=True)
    return (x - mean) * jax.lax.rsqrt(var + eps) * g + b


# ---------------- Pallas kernels --------------------------------------------
def _linear_kernel(x_ref, w_ref, b_ref, o_ref):
    y = jnp.dot(x_ref[...].astype(jnp.bfloat16), w_ref[...].astype(jnp.bfloat16),
                preferred_element_type=jnp.float32) + b_ref[...]
    o_ref[...] = y.astype(o_ref.dtype)


def linear(x, w, b):
    M, K = x.shape
    N = w.shape[1]
    tm = _row_tile(M)
    return pl.pallas_call(
        _linear_kernel,
        out_shape=jax.ShapeDtypeStruct((M, N), jnp.float32),
        grid=(M // tm,),
        in_specs=[
            pl.BlockSpec((tm, K), lambda i: (i, 0)),
            pl.BlockSpec((K, N), lambda i: (0, 0)),
            pl.BlockSpec((1, N), lambda i: (0, 0)),
        ],
        out_specs=pl.BlockSpec((tm, N), lambda i: (i, 0)),
        compiler_params=_PARALLEL,
    )(x, w, b.reshape(1, N))


def _ln_linear_kernel(x_ref, g_ref, bl_ref, w_ref, b_ref, o_ref, *, eps):
    h = _ln_f32(x_ref[...].astype(jnp.float32), g_ref[...], bl_ref[...], eps)
    y = jnp.dot(h.astype(jnp.bfloat16), w_ref[...].astype(jnp.bfloat16),
                preferred_element_type=jnp.float32) + b_ref[...]
    o_ref[...] = y.astype(o_ref.dtype)


def ln_linear(x, ln_g, ln_b, w, b, eps=LN_EPS):
    """y = LayerNorm(x) @ w + b   (fused LN + matmul, e.g. LN1 + QKV)."""
    M, D = x.shape
    N = w.shape[1]
    tm = _row_tile(M)
    return pl.pallas_call(
        functools.partial(_ln_linear_kernel, eps=eps),
        out_shape=jax.ShapeDtypeStruct((M, N), jnp.float32),
        grid=(M // tm,),
        in_specs=[
            pl.BlockSpec((tm, D), lambda i: (i, 0)),
            pl.BlockSpec((1, D), lambda i: (0, 0)),
            pl.BlockSpec((1, D), lambda i: (0, 0)),
            pl.BlockSpec((D, N), lambda i: (0, 0)),
            pl.BlockSpec((1, N), lambda i: (0, 0)),
        ],
        out_specs=pl.BlockSpec((tm, N), lambda i: (i, 0)),
        compiler_params=_PARALLEL,
    )(x, ln_g.reshape(1, D), ln_b.reshape(1, D), w, b.reshape(1, N))


def _attn_proj_res_kernel(qkv_ref, wp_ref, bp_ref, res_ref, o_ref, *,
                          scale, s_real, heads, head_dim):
    """All heads of one batch element; softmax(QK^T)V folded straight into the
    per-head slice of W_proj, plus residual.  Lane-dense (S_pad, E) output."""
    E = heads * head_dim
    qkv = qkv_ref[0].astype(jnp.float32)          # (S_pad, 3E)
    s_pad = qkv.shape[0]
    q_all = qkv[:, :E] * scale                    # fold softmax scale into q
    k_all = qkv[:, E:2 * E]
    v_all = qkv[:, 2 * E:]

    if s_real < s_pad:                            # mask padded keys (static)
        key_pos = jax.lax.broadcasted_iota(jnp.int32, (1, s_pad), 1)
        mask_bias = jnp.where(key_pos < s_real, 0.0, -1e30).astype(jnp.float32)
    else:
        mask_bias = None

    acc = jnp.zeros((s_pad, E), jnp.float32)
    for h in range(heads):                        # static unroll over heads
        sl = slice(h * head_dim, (h + 1) * head_dim)
        qh = q_all[:, sl].astype(jnp.bfloat16)
        kh = k_all[:, sl].astype(jnp.bfloat16)
        vh = v_all[:, sl].astype(jnp.bfloat16)
        s = jax.lax.dot_general(qh, kh, (((1,), (1,)), ((), ())),
                                preferred_element_type=jnp.float32)
        if mask_bias is not None:
            s = s + mask_bias
        s = s - jnp.max(s, axis=-1, keepdims=True)
        p = jnp.exp(s)
        p = p * pl.reciprocal(jnp.sum(p, axis=-1, keepdims=True), approx=True)
        oh = jnp.dot(p.astype(jnp.bfloat16), vh,
                     preferred_element_type=jnp.float32)
        acc = acc + jnp.dot(oh.astype(jnp.bfloat16),
                            wp_ref[sl, :].astype(jnp.bfloat16),
                            preferred_element_type=jnp.float32)
    out = res_ref[0].astype(jnp.float32) + acc + bp_ref[...]
    o_ref[0] = out.astype(o_ref.dtype)


def attn_proj_residual(qkv, w_proj, b_proj, res, scale, s_real):
    """y = res + (MHSA(qkv)) @ w_proj + b_proj   (attention half-block, fused)."""
    B, S_pad, threeE = qkv.shape
    E = threeE // 3
    return pl.pallas_call(
        functools.partial(_attn_proj_res_kernel, scale=scale, s_real=s_real,
                          heads=HEADS, head_dim=HEAD_DIM),
        out_shape=jax.ShapeDtypeStruct((B, S_pad, E), jnp.float32),
        grid=(B,),
        in_specs=[
            pl.BlockSpec((1, S_pad, threeE), lambda b: (b, 0, 0)),
            pl.BlockSpec((E, E), lambda b: (0, 0)),
            pl.BlockSpec((1, E), lambda b: (0, 0)),
            pl.BlockSpec((1, S_pad, E), lambda b: (b, 0, 0)),
        ],
        out_specs=pl.BlockSpec((1, S_pad, E), lambda b: (b, 0, 0)),
        compiler_params=_PARALLEL,
    )(qkv, w_proj, b_proj.reshape(1, E), res)


def _ln_mlp_residual_kernel(x_ref, g_ref, bl_ref, w1_ref, b1_ref, w2_ref, b2_ref,
                            o_ref, *, eps):
    x = x_ref[...].astype(jnp.float32)
    h = _ln_f32(x, g_ref[...], bl_ref[...], eps)
    h1 = jnp.dot(h.astype(jnp.bfloat16), w1_ref[...].astype(jnp.bfloat16),
                 preferred_element_type=jnp.float32) + b1_ref[...]
    # TODO(synk): PyTorch nn.GELU defaults to exact erf GELU; tanh approx used here.
    h1 = jax.nn.gelu(h1, approximate=True)
    y = jnp.dot(h1.astype(jnp.bfloat16), w2_ref[...].astype(jnp.bfloat16),
                preferred_element_type=jnp.float32) + b2_ref[...]
    o_ref[...] = (x + y).astype(o_ref.dtype)


def ln_mlp_residual(x, ln_g, ln_b, w1, b1, w2, b2, eps=LN_EPS):
    """y = x + FC2(GELU(FC1(LayerNorm(x))))   (fully fused MLP half-block)."""
    M, D = x.shape
    H = w1.shape[1]
    tm = _row_tile(M)
    return pl.pallas_call(
        functools.partial(_ln_mlp_residual_kernel, eps=eps),
        out_shape=jax.ShapeDtypeStruct((M, D), jnp.float32),
        grid=(M // tm,),
        in_specs=[
            pl.BlockSpec((tm, D), lambda i: (i, 0)),
            pl.BlockSpec((1, D), lambda i: (0, 0)),
            pl.BlockSpec((1, D), lambda i: (0, 0)),
            pl.BlockSpec((D, H), lambda i: (0, 0)),
            pl.BlockSpec((1, H), lambda i: (0, 0)),
            pl.BlockSpec((H, D), lambda i: (0, 0)),
            pl.BlockSpec((1, D), lambda i: (0, 0)),
        ],
        out_specs=pl.BlockSpec((tm, D), lambda i: (i, 0)),
        compiler_params=_PARALLEL,
    )(x, ln_g.reshape(1, D), ln_b.reshape(1, D), w1, b1.reshape(1, H),
      w2, b2.reshape(1, D))


def _layernorm_kernel(x_ref, g_ref, b_ref, o_ref, *, eps):
    o_ref[...] = _ln_f32(x_ref[...].astype(jnp.float32), g_ref[...], b_ref[...],
                         eps).astype(o_ref.dtype)


def layernorm(x, g, b, eps=LN_EPS):
    M, D = x.shape
    tm = _row_tile(M)
    return pl.pallas_call(
        functools.partial(_layernorm_kernel, eps=eps),
        out_shape=jax.ShapeDtypeStruct((M, D), jnp.float32),
        grid=(M // tm,),
        in_specs=[
            pl.BlockSpec((tm, D), lambda i: (i, 0)),
            pl.BlockSpec((1, D), lambda i: (0, 0)),
            pl.BlockSpec((1, D), lambda i: (0, 0)),
        ],
        out_specs=pl.BlockSpec((tm, D), lambda i: (i, 0)),
        compiler_params=_PARALLEL,
    )(x, g.reshape(1, D), b.reshape(1, D))


# ---------------- ScaleMAE GSD-scaled sin/cos positional embedding (glue) ---
def scalemae_pos_embed(embed_dim, grid_size, res):
    """res: (B,) meters-per-pixel. Returns (B, 1 + grid_size**2, D); cls slot is 0."""
    coords = jnp.arange(grid_size, dtype=jnp.float32)
    gw, gh = jnp.meshgrid(coords, coords, indexing="xy")
    grid = jnp.stack([gw, gh], axis=0)                    # (2, g, g)
    grid = jnp.einsum("chw,n->cnhw", grid, res)           # (2, B, g, g)

    def emb_1d(dim, pos):
        omega = jnp.arange(dim // 2, dtype=jnp.float32) / (dim / 2.0)
        omega = 1.0 / (10000.0 ** omega)
        out = pos.reshape(-1)[:, None] * omega[None, :]
        return jnp.concatenate([jnp.sin(out), jnp.cos(out)], axis=1)

    emb = jnp.concatenate(
        [emb_1d(embed_dim // 2, grid[0]), emb_1d(embed_dim // 2, grid[1])], axis=1
    )
    B = res.shape[0]
    emb = emb.reshape(B, grid_size * grid_size, embed_dim)
    return jnp.concatenate([jnp.zeros((B, 1, embed_dim), emb.dtype), emb], axis=1)


# ---------------- parameters (deterministic synthetic init) ------------------
def init_params(key):
    keys = jax.random.split(key, 4 + DEPTH)
    std = 0.02
    params = {
        "patch_w": jax.random.normal(keys[0], (EMBED, IN_CH, PATCH, PATCH), jnp.float32) * std,
        "patch_b": jnp.zeros((EMBED,), jnp.float32),
        "cls_token": jax.random.normal(keys[1], (1, 1, EMBED), jnp.float32) * std,
        "norm_g": jnp.ones((EMBED,), jnp.float32),
        "norm_b": jnp.zeros((EMBED,), jnp.float32),
        "blocks": [],
    }
    for d in range(DEPTH):
        bk = jax.random.split(keys[4 + d], 4)
        params["blocks"].append({
            "ln1_g": jnp.ones((EMBED,), jnp.float32),
            "ln1_b": jnp.zeros((EMBED,), jnp.float32),
            "w_qkv": jax.random.normal(bk[0], (EMBED, 3 * EMBED), jnp.float32) * std,
            "b_qkv": jnp.zeros((3 * EMBED,), jnp.float32),
            "w_proj": jax.random.normal(bk[1], (EMBED, EMBED), jnp.float32) * std,
            "b_proj": jnp.zeros((EMBED,), jnp.float32),
            "ln2_g": jnp.ones((EMBED,), jnp.float32),
            "ln2_b": jnp.zeros((EMBED,), jnp.float32),
            "w_fc1": jax.random.normal(bk[2], (EMBED, MLP_HIDDEN), jnp.float32) * std,
            "b_fc1": jnp.zeros((MLP_HIDDEN,), jnp.float32),
            "w_fc2": jax.random.normal(bk[3], (MLP_HIDDEN, EMBED), jnp.float32) * std,
            "b_fc2": jnp.zeros((EMBED,), jnp.float32),
        })
    return params


# ---------------- forward pass -----------------------------------------------
def sat_img_encoder_forward(params, images, input_res):
    """images: (B, C, H, W) NCHW; input_res: (1,) or (B,) meters/pixel.
    Returns (cls (B, D), features (B, num_patches, D))."""
    B, C, H, W = images.shape
    Hp, Wp = H // PATCH, W // PATCH
    S = 1 + Hp * Wp
    S_pad = ((S + 7) // 8) * 8           # pad token axis once, mask in attention

    # --- patch embedding: Conv2d(k=stride=PATCH) == linear over unfolded patches ---
    patches = images.reshape(B, C, Hp, PATCH, Wp, PATCH)
    patches = patches.transpose(0, 2, 4, 1, 3, 5).reshape(B * Hp * Wp, C * PATCH * PATCH)
    w_pe = params["patch_w"].reshape(EMBED, C * PATCH * PATCH).T.astype(jnp.bfloat16)
    tok = linear(patches, w_pe, params["patch_b"]).reshape(B, Hp * Wp, EMBED)

    # --- GSD-scaled positional embedding + cls token -----------------------------
    res = jnp.broadcast_to(input_res.reshape(-1), (B,)).astype(jnp.float32)
    pos = scalemae_pos_embed(EMBED, Hp, res)                     # (B, S, D)
    tok = tok + pos[:, 1:, :]
    cls = params["cls_token"] + pos[:, :1, :]                    # cls pos-embed is zeros
    x = jnp.concatenate([jnp.broadcast_to(cls, (B, 1, EMBED)), tok], axis=1)
    x = jnp.pad(x, ((0, 0), (0, S_pad - S), (0, 0)))             # (B, S_pad, D)

    # --- transformer blocks: x = x + Attn(LN(x)); x = x + MLP(LN(x)) --------------
    scale = HEAD_DIM ** -0.5
    x2 = x.reshape(B * S_pad, EMBED)
    for p in params["blocks"]:
        # weights staged to bf16 once per block (halves weight DMA into kernels)
        w_qkv = p["w_qkv"].astype(jnp.bfloat16)
        w_proj = p["w_proj"].astype(jnp.bfloat16)
        w_fc1 = p["w_fc1"].astype(jnp.bfloat16)
        w_fc2 = p["w_fc2"].astype(jnp.bfloat16)

        qkv = ln_linear(x2, p["ln1_g"], p["ln1_b"], w_qkv, p["b_qkv"])
        x3 = attn_proj_residual(qkv.reshape(B, S_pad, 3 * EMBED), w_proj,
                                p["b_proj"], x2.reshape(B, S_pad, EMBED),
                                scale, S)
        x2 = x3.reshape(B * S_pad, EMBED)
        x2 = ln_mlp_residual(x2, p["ln2_g"], p["ln2_b"],
                             w_fc1, p["b_fc1"], w_fc2, p["b_fc2"])

    # --- final LayerNorm, drop pad tokens, split cls / patch features ------------
    x2 = layernorm(x2, params["norm_g"], params["norm_b"])
    x = x2.reshape(B, S_pad, EMBED)[:, :S]
    return x[:, 0], x[:, 1:]


# ---------------- main --------------------------------------------------------
if __name__ == "__main__":
    key = jax.random.PRNGKey(0)
    pkey, ikey = jax.random.split(key)
    params = init_params(pkey)

    images = jax.random.normal(ikey, (2, IN_CH, IMG, IMG), jnp.float32)
    input_res = jnp.array([10.0], dtype=jnp.float32)   # meters per pixel

    fwd = jax.jit(sat_img_encoder_forward)
    cls_feat, patch_feat = fwd(params, images, input_res)
    jax.block_until_ready((cls_feat, patch_feat))

    assert cls_feat.shape == (2, EMBED)
    assert patch_feat.shape == (2, NUM_PATCHES, EMBED)
    assert bool(jnp.all(jnp.isfinite(cls_feat))) and bool(jnp.all(jnp.isfinite(patch_feat)))
    print("KERNEL_OK")
</pallas_src>

<mosaic_0001>
module attributes {stable_mosaic.version = 11 : i64} {
  func.func @_linear_kernel(%arg0: i32, %arg1: memref<32x192xf32, #tpu.memory_space<vmem>>, %arg2: memref<192x128xbf16, #tpu.memory_space<vmem>>, %arg3: memref<1x128xf32, #tpu.memory_space<vmem>>, %arg4: memref<32x128xf32, #tpu.memory_space<vmem>>) attributes {dimension_semantics = [#tpu.dimension_semantics<parallel>], iteration_bounds = array<i64: 1>, scalar_prefetch = 0 : i64, scratch_operands = 0 : i64, tpu.core_type = #tpu.core_type<tc>, window_params = [{transform_indices = @transform_0, window_bounds = array<i64: 32, 192>}, {pipeline_mode = #tpu.pipeline_mode<synchronous>, transform_indices = @transform_1, window_bounds = array<i64: 192, 128>}, {pipeline_mode = #tpu.pipeline_mode<synchronous>, transform_indices = @transform_2, window_bounds = array<i64: 1, 128>}, {transform_indices = @transform_3, window_bounds = array<i64: 32, 128>}]} {
    %c0 = arith.constant 0 : index
    %c0_0 = arith.constant 0 : index
    %0 = vector.load %arg1[%c0, %c0_0] : memref<32x192xf32, #tpu.memory_space<vmem>>, vector<32x192xf32>
    %1 = arith.truncf %0 : vector<32x192xf32> to vector<32x192xbf16>
    %c0_1 = arith.constant 0 : index
    %c0_2 = arith.constant 0 : index
    %2 = vector.load %arg2[%c0_1, %c0_2] : memref<192x128xbf16, #tpu.memory_space<vmem>>, vector<192x128xbf16>
    %cst = arith.constant dense<0.000000e+00> : vector<32x128xf32>
    %3 = tpu.matmul %1, %2, %cst {dimension_numbers = #tpu.dot_dimension_numbers<[1], [0], [0], [1], [0, 0, 1, 1], [], []>} : vector<32x192xbf16>, vector<192x128xbf16>, vector<32x128xf32> -> vector<32x128xf32>
    %c0_3 = arith.constant 0 : index
    %c0_4 = arith.constant 0 : index
    %4 = vector.load %arg3[%c0_3, %c0_4] : memref<1x128xf32, #tpu.memory_space<vmem>>, vector<1x128xf32>
    %5 = vector.broadcast %4 : vector<1x128xf32> to vector<32x128xf32>
    %6 = arith.addf %3, %5 : vector<32x128xf32>
    %c0_5 = arith.constant 0 : index
    %c0_6 = arith.constant 0 : index
    %7 = vector.load %arg4[%c0_5, %c0_6] : memref<32x128xf32, #tpu.memory_space<vmem>>, vector<32x128xf32>
    tpu.vector_store %arg4[%c0_5, %c0_6], %6 {strides = array<i32>} : memref<32x128xf32, #tpu.memory_space<vmem>>, vector<32x128xf32>,
    return
  }
  func.func @transform_0(%arg0: i32) -> (i32, i32) {
    %c0_i32 = arith.constant 0 : i32
    %c0_i32_0 = arith.constant 0 : i32
    return %arg0, %c0_i32 : i32, i32
  }
  func.func @transform_1(%arg0: i32) -> (i32, i32) {
    %c0_i32 = arith.constant 0 : i32
    %c0_i32_0 = arith.constant 0 : i32
    %c0_i32_1 = arith.constant 0 : i32
    return %c0_i32, %c0_i32_0 : i32, i32
  }
  func.func @transform_2(%arg0: i32) -> (i32, i32) {
    %c0_i32 = arith.constant 0 : i32
    %c0_i32_0 = arith.constant 0 : i32
    %c0_i32_1 = arith.constant 0 : i32
    return %c0_i32, %c0_i32_0 : i32, i32
  }
  func.func @transform_3(%arg0: i32) -> (i32, i32) {
    %c0_i32 = arith.constant 0 : i32
    %c0_i32_0 = arith.constant 0 : i32
    return %arg0, %c0_i32 : i32, i32
  }
}

module attributes {stable_mosaic.version = 11 : i64} {
  func.func @_ln_linear_kernel(%arg0: i32, %arg1: memref<16x128xf32, #tpu.memory_space<vmem>>, %arg2: memref<1x128xf32, #tpu.memory_space<vmem>>, %arg3: memref<1x128xf32, #tpu.memory_space<vmem>>, %arg4: memref<128x384xbf16, #tpu.memory_space<vmem>>, %arg5: memref<1x384xf32, #tpu.memory_space<vmem>>, %arg6: memref<16x384xf32, #tpu.memory_space<vmem>>) attributes {dimension_semantics = [#tpu.dimension_semantics<parallel>], iteration_bounds = array<i64: 3>, scalar_prefetch = 0 : i64, scratch_operands = 0 : i64, tpu.core_type = #tpu.core_type<tc>, window_params = [{transform_indices = @transform_0, window_bounds = array<i64: 16, 128>}, {pipeline_mode = #tpu.pipeline_mode<synchronous>, transform_indices = @transform_1, window_bounds = array<i64: 1, 128>}, {pipeline_mode = #tpu.pipeline_mode<synchronous>, transform_indices = @transform_2, window_bounds = array<i64: 1, 128>}, {pipeline_mode = #tpu.pipeline_mode<synchronous>, transform_indices = @transform_3, window_bounds = array<i64: 128, 384>}, {pipeline_mode = #tpu.pipeline_mode<synchronous>, transform_indices = @transform_4, window_bounds = array<i64: 1, 384>}, {transform_indices = @transform_5, window_bounds = array<i64: 16, 384>}]} {
    %c0 = arith.constant 0 : index
    %c0_0 = arith.constant 0 : index
    %0 = vector.load %arg1[%c0, %c0_0] : memref<16x128xf32, #tpu.memory_space<vmem>>, vector<16x128xf32>
    %c0_1 = arith.constant 0 : index
    %c0_2 = arith.constant 0 : index
    %1 = vector.load %arg2[%c0_1, %c0_2] : memref<1x128xf32, #tpu.memory_space<vmem>>, vector<1x128xf32>
    %c0_3 = arith.constant 0 : index
    %c0_4 = arith.constant 0 : index
    %2 = vector.load %arg3[%c0_3, %c0_4] : memref<1x128xf32, #tpu.memory_space<vmem>>, vector<1x128xf32>
    %cst = arith.constant dense<0.000000e+00> : vector<16xf32>
    %3 = vector.multi_reduction <add>, %0, %cst [1] : vector<16x128xf32> to vector<16xf32>
    %4 = vector.shape_cast %3 : vector<16xf32> to vector<16x1xf32>
    %cst_5 = arith.constant 1.280000e+02 : f32
    %5 = vector.broadcast %cst_5 : f32 to vector<16x1xf32>
    %6 = arith.divf %4, %5 : vector<16x1xf32>
    %7 = vector.broadcast %6 : vector<16x1xf32> to vector<16x128xf32>
    %8 = arith.subf %0, %7 : vector<16x128xf32>
    %9 = arith.mulf %8, %8 : vector<16x128xf32>
    %cst_6 = arith.constant dense<0.000000e+00> : vector<16xf32>
    %10 = vector.multi_reduction <add>, %9, %cst_6 [1] : vector<16x128xf32> to vector<16xf32>
    %11 = vector.shape_cast %10 : vector<16xf32> to vector<16x1xf32>
    %cst_7 = arith.constant 1.280000e+02 : f32
    %12 = vector.broadcast %cst_7 : f32 to vector<16x1xf32>
    %13 = arith.divf %11, %12 : vector<16x1xf32>
    %14 = vector.broadcast %6 : vector<16x1xf32> to vector<16x128xf32>
    %15 = arith.subf %0, %14 : vector<16x128xf32>
    %cst_8 = arith.constant 9.99999997E-7 : f32
    %16 = vector.broadcast %cst_8 : f32 to vector<16x1xf32>
    %17 = arith.addf %13, %16 : vector<16x1xf32>
    %18 = math.rsqrt %17 : vector<16x1xf32>
    %19 = vector.broadcast %18 : vector<16x1xf32> to vector<16x128xf32>
    %20 = arith.mulf %15, %19 : vector<16x128xf32>
    %21 = vector.broadcast %1 : vector<1x128xf32> to vector<16x128xf32>
    %22 = arith.mulf %20, %21 : vector<16x128xf32>
    %23 = vector.broadcast %2 : vector<1x128xf32> to vector<16x128xf32>
    %24 = arith.addf %22, %23 : vector<16x128xf32>
    %25 = arith.truncf %24 : vector<16x128xf32> to vector<16x128xbf16>
    %c0_9 = arith.constant 0 : index
    %c0_10 = arith.constant 0 : index
    %26 = vector.load %arg4[%c0_9, %c0_10] : memref<128x384xbf16, #tpu.memory_space<vmem>>, vector<128x384xbf16>
    %cst_11 = arith.constant dense<0.000000e+00> : vector<16x384xf32>
    %27 = tpu.matmul %25, %26, %cst_11 {dimension_numbers = #tpu.dot_dimension_numbers<[1], [0], [0], [1], [0, 0, 1, 1], [], []>} : vector<16x128xbf16>, vector<128x384xbf16>, vector<16x384xf32> -> vector<16x384xf32>
    %c0_12 = arith.constant 0 : index
    %c0_13 = arith.constant 0 : index
    %28 = vector.load %arg5[%c0_12, %c0_13] : memref<1x384xf32, #tpu.memory_space<vmem>>, vector<1x384xf32>
    %29 = vector.broadcast %28 : vector<1x384xf32> to vector<16x384xf32>
    %30 = arith.addf %27, %29 : vector<16x384xf32>
    %c0_14 = arith.constant 0 : index
    %c0_15 = arith.constant 0 : index
    %31 = vector.load %arg6[%c0_14, %c0_15] : memref<16x384xf32, #tpu.memory_space<vmem>>, vector<16x384xf32>
    tpu.vector_store %arg6[%c0_14, %c0_15], %30 {strides = array<i32>} : memref<16x384xf32, #tpu.memory_space<vmem>>, vector<16x384xf32>,
    return
  }
  func.func @transform_0(%arg0: i32) -> (i32, i32) {
    %c0_i32 = arith.constant 0 : i32
    %c0_i32_0 = arith.constant 0 : i32
    return %arg0, %c0_i32 : i32, i32
  }
  func.func @transform_1(%arg0: i32) -> (i32, i32) {
    %c0_i32 = arith.constant 0 : i32
    %c0_i32_0 = arith.constant 0 : i32
    %c0_i32_1 = arith.constant 0 : i32
    return %c0_i32, %c0_i32_0 : i32, i32
  }
  func.func @transform_2(%arg0: i32) -> (i32, i32) {
    %c0_i32 = arith.constant 0 : i32
    %c0_i32_0 = arith.constant 0 : i32
    %c0_i32_1 = arith.constant 0 : i32
    return %c0_i32, %c0_i32_0 : i32, i32
  }
  func.func @transform_3(%arg0: i32) -> (i32, i32) {
    %c0_i32 = arith.constant 0 : i32
    %c0_i32_0 = arith.constant 0 : i32
    %c0_i32_1 = arith.constant 0 : i32
    return %c0_i32, %c0_i32_0 : i32, i32
  }
  func.func @transform_4(%arg0: i32) -> (i32, i32) {
    %c0_i32 = arith.constant 0 : i32
    %c0_i32_0 = arith.constant 0 : i32
    %c0_i32_1 = arith.constant 0 : i32
    return %c0_i32, %c0_i32_0 : i32, i32
  }
  func.func @transform_5(%arg0: i32) -> (i32, i32) {
    %c0_i32 = arith.constant 0 : i32
    %c0_i32_0 = arith.constant 0 : i32
    return %arg0, %c0_i32 : i32, i32
  }
}

module attributes {stable_mosaic.version = 11 : i64} {
  func.func @_attn_proj_res_kernel(%arg0: i32, %arg1: memref<1x24x384xf32, #tpu.memory_space<vmem>>, %arg2: memref<128x128xbf16, #tpu.memory_space<vmem>>, %arg3: memref<1x128xf32, #tpu.memory_space<vmem>>, %arg4: memref<1x24x128xf32, #tpu.memory_space<vmem>>, %arg5: memref<1x24x128xf32, #tpu.memory_space<vmem>>) attributes {dimension_semantics = [#tpu.dimension_semantics<parallel>], iteration_bounds = array<i64: 2>, scalar_prefetch = 0 : i64, scratch_operands = 0 : i64, tpu.core_type = #tpu.core_type<tc>, window_params = [{transform_indices = @transform_0, window_bounds = array<i64: 1, 24, 384>}, {pipeline_mode = #tpu.pipeline_mode<synchronous>, transform_indices = @transform_1, window_bounds = array<i64: 128, 128>}, {pipeline_mode = #tpu.pipeline_mode<synchronous>, transform_indices = @transform_2, window_bounds = array<i64: 1, 128>}, {transform_indices = @transform_3, window_bounds = array<i64: 1, 24, 128>}, {transform_indices = @transform_4, window_bounds = array<i64: 1, 24, 128>}]} {
    %c0 = arith.constant 0 : index
    %c0_0 = arith.constant 0 : index
    %c0_1 = arith.constant 0 : index
    %0 = vector.load %arg1[%c0, %c0_0, %c0_1] : memref<1x24x384xf32, #tpu.memory_space<vmem>>, vector<1x24x384xf32>
    %1 = vector.shape_cast %0 : vector<1x24x384xf32> to vector<24x384xf32>
    %2 = vector.extract_strided_slice %1 {offsets = [0, 0], sizes = [24, 128], strides = [1, 1]} : vector<24x384xf32> to vector<24x128xf32>
    %cst = arith.constant 0.176776692 : f32
    %3 = vector.broadcast %cst : f32 to vector<24x128xf32>
    %4 = arith.mulf %2, %3 : vector<24x128xf32>
    %5 = vector.extract_strided_slice %1 {offsets = [0, 128], sizes = [24, 128], strides = [1, 1]} : vector<24x384xf32> to vector<24x128xf32>
    %6 = vector.extract_strided_slice %1 {offsets = [0, 256], sizes = [24, 128], strides = [1, 1]} : vector<24x384xf32> to vector<24x128xf32>
    %7 = tpu.iota {dimensions = array<i32: 1>} : vector<1x24xi32>
    %c17_i32 = arith.constant 17 : i32
    %8 = vector.broadcast %c17_i32 : i32 to vector<1x24xi32>
    %9 = arith.cmpi slt, %7, %8 : vector<1x24xi32>
    %cst_2 = arith.constant 0.000000e+00 : f32
    %cst_3 = arith.constant -1.000000e+30 : f32
    %10 = vector.broadcast %cst_2 : f32 to vector<1x24xf32>
    %11 = vector.broadcast %cst_3 : f32 to vector<1x24xf32>
    %12 = arith.select %9, %10, %11 : vector<1x24xi1>, vector<1x24xf32>
    %cst_4 = arith.constant 0.000000e+00 : f32
    %13 = vector.broadcast %cst_4 : f32 to vector<24x128xf32>
    %14 = vector.extract_strided_slice %4 {offsets = [0, 0], sizes = [24, 32], strides = [1, 1]} : vector<24x128xf32> to vector<24x32xf32>
    %15 = arith.truncf %14 : vector<24x32xf32> to vector<24x32xbf16>
    %16 = vector.extract_strided_slice %5 {offsets = [0, 0], sizes = [24, 32], strides = [1, 1]} : vector<24x128xf32> to vector<24x32xf32>
    %17 = arith.truncf %16 : vector<24x32xf32> to vector<24x32xbf16>
    %18 = vector.extract_strided_slice %6 {offsets = [0, 0], sizes = [24, 32], strides = [1, 1]} : vector<24x128xf32> to vector<24x32xf32>
    %19 = arith.truncf %18 : vector<24x32xf32> to vector<24x32xbf16>
    %cst_5 = arith.constant dense<0.000000e+00> : vector<24x24xf32>
    %20 = tpu.matmul %15, %17, %cst_5 {dimension_numbers = #tpu.dot_dimension_numbers<[1], [1], [0], [0], [0, 0, 1, 0], [], []>} : vector<24x32xbf16>, vector<24x32xbf16>, vector<24x24xf32> -> vector<24x24xf32>
    %21 = vector.broadcast %12 : vector<1x24xf32> to vector<24x24xf32>
    %22 = arith.addf %20, %21 : vector<24x24xf32>
    %cst_6 = arith.constant dense<0xFF800000> : vector<24xf32>
    %23 = vector.multi_reduction <maximumf>, %22, %cst_6 [1] : vector<24x24xf32> to vector<24xf32>
    %24 = vector.shape_cast %23 : vector<24xf32> to vector<24x1xf32>
    %25 = vector.broadcast %24 : vector<24x1xf32> to vector<24x24xf32>
    %26 = arith.subf %22, %25 : vector<24x24xf32>
    %27 = math.exp %26 : vector<24x24xf32>
    %cst_7 = arith.constant dense<0.000000e+00> : vector<24xf32>
    %28 = vector.multi_reduction <add>, %27, %cst_7 [1] : vector<24x24xf32> to vector<24xf32>
    %29 = vector.shape_cast %28 : vector<24xf32> to vector<24x1xf32>
    %30 = tpu.reciprocal %29 {approx = true} : vector<24x1xf32> -> vector<24x1xf32>
    %31 = vector.broadcast %30 : vector<24x1xf32> to vector<24x24xf32>
    %32 = arith.mulf %27, %31 : vector<24x24xf32>
    %33 = arith.truncf %32 : vector<24x24xf32> to vector<24x24xbf16>
    %cst_8 = arith.constant dense<0.000000e+00> : vector<24x32xf32>
    %34 = tpu.matmul %33, %19, %cst_8 {dimension_numbers = #tpu.dot_dimension_numbers<[1], [0], [0], [1], [0, 0, 1, 1], [], []>} : vector<24x24xbf16>, vector<24x32xbf16>, vector<24x32xf32> -> vector<24x32xf32>
    %35 = arith.truncf %34 : vector<24x32xf32> to vector<24x32xbf16>
    %c0_9 = arith.constant 0 : index
    %c0_10 = arith.constant 0 : index
    %36 = vector.load %arg2[%c0_9, %c0_10] : memref<128x128xbf16, #tpu.memory_space<vmem>>, vector<32x128xbf16>
    %cst_11 = arith.constant dense<0.000000e+00> : vector<24x128xf32>
    %37 = tpu.matmul %35, %36, %cst_11 {dimension_numbers = #tpu.dot_dimension_numbers<[1], [0], [0], [1], [0, 0, 1, 1], [], []>} : vector<24x32xbf16>, vector<32x128xbf16>, vector<24x128xf32> -> vector<24x128xf32>
    %38 = arith.addf %13, %37 : vector<24x128xf32>
    %39 = vector.extract_strided_slice %4 {offsets = [0, 32], sizes = [24, 32], strides = [1, 1]} : vector<24x128xf32> to vector<24x32xf32>
    %40 = arith.truncf %39 : vector<24x32xf32> to vector<24x32xbf16>
    %41 = vector.extract_strided_slice %5 {offsets = [0, 32], sizes = [24, 32], strides = [1, 1]} : vector<24x128xf32> to vector<24x32xf32>
    %42 = arith.truncf %41 : vector<24x32xf32> to vector<24x32xbf16>
    %43 = vector.extract_strided_slice %6 {offsets = [0, 32], sizes = [24, 32], strides = [1, 1]} : vector<24x128xf32> to vector<24x32xf32>
    %44 = arith.truncf %43 : vector<24x32xf32> to vector<24x32xbf16>
    %cst_12 = arith.constant dense<0.000000e+00> : vector<24x24xf32>
    %45 = tpu.matmul %40, %42, %cst_12 {dimension_numbers = #tpu.dot_dimension_numbers<[1], [1], [0], [0], [0, 0, 1, 0], [], []>} : vector<24x32xbf16>, vector<24x32xbf16>, vector<24x24xf32> -> vector<24x24xf32>
    %46 = vector.broadcast %12 : vector<1x24xf32> to vector<24x24xf32>
    %47 = arith.addf %45, %46 : vector<24x24xf32>
    %cst_13 = arith.constant dense<0xFF800000> : vector<24xf32>
    %48 = vector.multi_reduction <maximumf>, %47, %cst_13 [1] : vector<24x24xf32> to vector<24xf32>
    %49 = vector.shape_cast %48 : vector<24xf32> to vector<24x1xf32>
    %50 = vector.broadcast %49 : vector<24x1xf32> to vector<24x24xf32>
    %51 = arith.subf %47, %50 : vector<24x24xf32>
    %52 = math.exp %51 : vector<24x24xf32>
    %cst_14 = arith.constant dense<0.000000e+00> : vector<24xf32>
    %53 = vector.multi_reduction <add>, %52, %cst_14 [1] : vector<24x24xf32> to vector<24xf32>
    %54 = vector.shape_cast %53 : vector<24xf32> to vector<24x1xf32>
    %55 = tpu.reciprocal %54 {approx = true} : vector<24x1xf32> -> vector<24x1xf32>
    %56 = vector.broadcast %55 : vector<24x1xf32> to vector<24x24xf32>
    %57 = arith.mulf %52, %56 : vector<24x24xf32>
    %58 = arith.truncf %57 : vector<24x24xf32> to vector<24x24xbf16>
    %cst_15 = arith.constant dense<0.000000e+00> : vector<24x32xf32>
    %59 = tpu.matmul %58, %44, %cst_15 {dimension_numbers = #tpu.dot_dimension_numbers<[1], [0], [0], [1], [0, 0, 1, 1], [], []>} : vector<24x24xbf16>, vector<24x32xbf16>, vector<24x32xf32> -> vector<24x32xf32>
    %60 = arith.truncf %59 : vector<24x32xf32> to vector<24x32xbf16>
    %c32 = arith.constant 32 : index
    %c0_16 = arith.constant 0 : index
    %61 = vector.load %arg2[%c32, %c0_16] : memref<128x128xbf16, #tpu.memory_space<vmem>>, vector<32x128xbf16>
    %cst_17 = arith.constant dense<0.000000e+00> : vector<24x128xf32>
    %62 = tpu.matmul %60, %61, %cst_17 {dimension_numbers = #tpu.dot_dimension_numbers<[1], [0], [0], [1], [0, 0, 1, 1], [], []>} : vector<24x32xbf16>, vector<32x128xbf16>, vector<24x128xf32> -> vector<24x128xf32>
    %63 = arith.addf %38, %62 : vector<24x128xf32>
    %64 = vector.extract_strided_slice %4 {offsets = [0, 64], sizes = [24, 32], strides = [1, 1]} : vector<24x128xf32> to vector<24x32xf32>
    %65 = arith.truncf %64 : vector<24x32xf32> to vector<24x32xbf16>
    %66 = vector.extract_strided_slice %5 {offsets = [0, 64], sizes = [24, 32], strides = [1, 1]} : vector<24x128xf32> to vector<24x32xf32>
    %67 = arith.truncf %66 : vector<24x32xf32> to vector<24x32xbf16>
    %68 = vector.extract_strided_slice %6 {offsets = [0, 64], sizes = [24, 32], strides = [1, 1]} : vector<24x128xf32> to vector<24x32xf32>
    %69 = arith.truncf %68 : vector<24x32xf32> to vector<24x32xbf16>
    %cst_18 = arith.constant dense<0.000000e+00> : vector<24x24xf32>
    %70 = tpu.matmul %65, %67, %cst_18 {dimension_numbers = #tpu.dot_dimension_numbers<[1], [1], [0], [0], [0, 0, 1, 0], [], []>} : vector<24x32xbf16>, vector<24x32xbf16>, vector<24x24xf32> -> vector<24x24xf32>
    %71 = vector.broadcast %12 : vector<1x24xf32> to vector<24x24xf32>
    %72 = arith.addf %70, %71 : vector<24x24xf32>
    %cst_19 = arith.constant dense<0xFF800000> : vector<24xf32>
    %73 = vector.multi_reduction <maximumf>, %72, %cst_19 [1] : vector<24x24xf32> to vector<24xf32>
    %74 = vector.shape_cast %73 : vector<24xf32> to vector<24x1xf32>
    %75 = vector.broadcast %74 : vector<24x1xf32> to vector<24x24xf32>
    %76 = arith.subf %72, %75 : vector<24x24xf32>
    %77 = math.exp %76 : vector<24x24xf32>
    %cst_20 = arith.constant dense<0.000000e+00> : vector<24xf32>
    %78 = vector.multi_reduction <add>, %77, %cst_20 [1] : vector<24x24xf32> to vector<24xf32>
    %79 = vector.shape_cast %78 : vector<24xf32> to vector<24x1xf32>
    %80 = tpu.reciprocal %79 {approx = true} : vector<24x1xf32> -> vector<24x1xf32>
    %81 = vector.broadcast %80 : vector<24x1xf32> to vector<24x24xf32>
    %82 = arith.mulf %77, %81 : vector<24x24xf32>
    %83 = arith.truncf %82 : vector<24x24xf32> to vector<24x24xbf16>
    %cst_21 = arith.constant dense<0.000000e+00> : vector<24x32xf32>
    %84 = tpu.matmul %83, %69, %cst_21 {dimension_numbers = #tpu.dot_dimension_numbers<[1], [0], [0], [1], [0, 0, 1, 1], [], []>} : vector<24x24xbf16>, vector<24x32xbf16>, vector<24x32xf32> -> vector<24x32xf32>
    %85 = arith.truncf %84 : vector<24x32xf32> to vector<24x32xbf16>
    %c64 = arith.constant 64 : index
    %c0_22 = arith.constant 0 : index
    %86 = vector.load %arg2[%c64, %c0_22] : memref<128x128xbf16, #tpu.memory_space<vmem>>, vector<32x128xbf16>
    %cst_23 = arith.constant dense<0.000000e+00> : vector<24x128xf32>
    %87 = tpu.matmul %85, %86, %cst_23 {dimension_numbers = #tpu.dot_dimension_numbers<[1], [0], [0], [1], [0, 0, 1, 1], [], []>} : vector<24x32xbf16>, vector<32x128xbf16>, vector<24x128xf32> -> vector<24x128xf32>
    %88 = arith.addf %63, %87 : vector<24x128xf32>
    %89 = vector.extract_strided_slice %4 {offsets = [0, 96], sizes = [24, 32], strides = [1, 1]} : vector<24x128xf32> to vector<24x32xf32>
    %90 = arith.truncf %89 : vector<24x32xf32> to vector<24x32xbf16>
    %91 = vector.extract_strided_slice %5 {offsets = [0, 96], sizes = [24, 32], strides = [1, 1]} : vector<24x128xf32> to vector<24x32xf32>
    %92 = arith.truncf %91 : vector<24x32xf32> to vector<24x32xbf16>
    %93 = vector.extract_strided_slice %6 {offsets = [0, 96], sizes = [24, 32], strides = [1, 1]} : vector<24x128xf32> to vector<24x32xf32>
    %94 = arith.truncf %93 : vector<24x32xf32> to vector<24x32xbf16>
    %cst_24 = arith.constant dense<0.000000e+00> : vector<24x24xf32>
    %95 = tpu.matmul %90, %92, %cst_24 {dimension_numbers = #tpu.dot_dimension_numbers<[1], [1], [0], [0], [0, 0, 1, 0], [], []>} : vector<24x32xbf16>, vector<24x32xbf16>, vector<24x24xf32> -> vector<24x24xf32>
    %96 = vector.broadcast %12 : vector<1x24xf32> to vector<24x24xf32>
    %97 = arith.addf %95, %96 : vector<24x24xf32>
    %cst_25 = arith.constant dense<0xFF800000> : vector<24xf32>
    %98 = vector.multi_reduction <maximumf>, %97, %cst_25 [1] : vector<24x24xf32> to vector<24xf32>
    %99 = vector.shape_cast %98 : vector<24xf32> to vector<24x1xf32>
    %100 = vector.broadcast %99 : vector<24x1xf32> to vector<24x24xf32>
    %101 = arith.subf %97, %100 : vector<24x24xf32>
    %102 = math.exp %101 : vector<24x24xf32>
    %cst_26 = arith.constant dense<0.000000e+00> : vector<24xf32>
    %103 = vector.multi_reduction <add>, %102, %cst_26 [1] : vector<24x24xf32> to vector<24xf32>
    %104 = vector.shape_cast %103 : vector<24xf32> to vector<24x1xf32>
    %105 = tpu.reciprocal %104 {approx = true} : vector<24x1xf32> -> vector<24x1xf32>
    %106 = vector.broadcast %105 : vector<24x1xf32> to vector<24x24xf32>
    %107 = arith.mulf %102, %106 : vector<24x24xf32>
    %108 = arith.truncf %107 : vector<24x24xf32> to vector<24x24xbf16>
    %cst_27 = arith.constant dense<0.000000e+00> : vector<24x32xf32>
    %109 = tpu.matmul %108, %94, %cst_27 {dimension_numbers = #tpu.dot_dimension_numbers<[1], [0], [0], [1], [0, 0, 1, 1], [], []>} : vector<24x24xbf16>, vector<24x32xbf16>, vector<24x32xf32> -> vector<24x32xf32>
    %110 = arith.truncf %109 : vector<24x32xf32> to vector<24x32xbf16>
    %c96 = arith.constant 96 : index
    %c0_28 = arith.constant 0 : index
    %111 = vector.load %arg2[%c96, %c0_28] : memref<128x128xbf16, #tpu.memory_space<vmem>>, vector<32x128xbf16>
    %cst_29 = arith.constant dense<0.000000e+00> : vector<24x128xf32>
    %112 = tpu.matmul %110, %111, %cst_29 {dimension_numbers = #tpu.dot_dimension_numbers<[1], [0], [0], [1], [0, 0, 1, 1], [], []>} : vector<24x32xbf16>, vector<32x128xbf16>, vector<24x128xf32> -> vector<24x128xf32>
    %113 = arith.addf %88, %112 : vector<24x128xf32>
    %c0_30 = arith.constant 0 : index
    %c0_31 = arith.constant 0 : index
    %c0_32 = arith.constant 0 : index
    %114 = vector.load %arg4[%c0_30, %c0_31, %c0_32] : memref<1x24x128xf32, #tpu.memory_space<vmem>>, vector<1x24x128xf32>
    %115 = vector.shape_cast %114 : vector<1x24x128xf32> to vector<24x128xf32>
    %116 = arith.addf %115, %113 : vector<24x128xf32>
    %c0_33 = arith.constant 0 : index
    %c0_34 = arith.constant 0 : index
    %117 = vector.load %arg3[%c0_33, %c0_34] : memref<1x128xf32, #tpu.memory_space<vmem>>, vector<1x128xf32>
    %118 = vector.broadcast %117 : vector<1x128xf32> to vector<24x128xf32>
    %119 = arith.addf %116, %118 : vector<24x128xf32>
    %c0_35 = arith.constant 0 : index
    %c0_36 = arith.constant 0 : index
    %c0_37 = arith.constant 0 : index
    %120 = vector.load %arg5[%c0_35, %c0_36, %c0_37] : memref<1x24x128xf32, #tpu.memory_space<vmem>>, vector<1x24x128xf32>
    %121 = vector.shape_cast %120 : vector<1x24x128xf32> to vector<24x128xf32>
    %122 = vector.shape_cast %119 : vector<24x128xf32> to vector<1x24x128xf32>
    tpu.vector_store %arg5[%c0_35, %c0_36, %c0_37], %122 {strides = array<i32>} : memref<1x24x128xf32, #tpu.memory_space<vmem>>, vector<1x24x128xf32>,
    return
  }
  func.func @transform_0(%arg0: i32) -> (i32, i32, i32) {
    %c0_i32 = arith.constant 0 : i32
    %c0_i32_0 = arith.constant 0 : i32
    %c0_i32_1 = arith.constant 0 : i32
    return %arg0, %c0_i32, %c0_i32_0 : i32, i32, i32
  }
  func.func @transform_1(%arg0: i32) -> (i32, i32) {
    %c0_i32 = arith.constant 0 : i32
    %c0_i32_0 = arith.constant 0 : i32
    %c0_i32_1 = arith.constant 0 : i32
    return %c0_i32, %c0_i32_0 : i32, i32
  }
  func.func @transform_2(%arg0: i32) -> (i32, i32) {
    %c0_i32 = arith.constant 0 : i32
    %c0_i32_0 = arith.constant 0 : i32
    %c0_i32_1 = arith.constant 0 : i32
    return %c0_i32, %c0_i32_0 : i32, i32
  }
  func.func @transform_3(%arg0: i32) -> (i32, i32, i32) {
    %c0_i32 = arith.constant 0 : i32
    %c0_i32_0 = arith.constant 0 : i32
    %c0_i32_1 = arith.constant 0 : i32
    return %arg0, %c0_i32, %c0_i32_0 : i32, i32, i32
  }
  func.func @transform_4(%arg0: i32) -> (i32, i32, i32) {
    %c0_i32 = arith.constant 0 : i32
    %c0_i32_0 = arith.constant 0 : i32
    %c0_i32_1 = arith.constant 0 : i32
    return %arg0, %c0_i32, %c0_i32_0 : i32, i32, i32
  }
}

module attributes {stable_mosaic.version = 11 : i64} {
  func.func @_ln_mlp_residual_kernel(%arg0: i32, %arg1: memref<16x128xf32, #tpu.memory_space<vmem>>, %arg2: memref<1x128xf32, #tpu.memory_space<vmem>>, %arg3: memref<1x128xf32, #tpu.memory_space<vmem>>, %arg4: memref<128x512xbf16, #tpu.memory_space<vmem>>, %arg5: memref<1x512xf32, #tpu.memory_space<vmem>>, %arg6: memref<512x128xbf16, #tpu.memory_space<vmem>>, %arg7: memref<1x128xf32, #tpu.memory_space<vmem>>, %arg8: memref<16x128xf32, #tpu.memory_space<vmem>>) attributes {dimension_semantics = [#tpu.dimension_semantics<parallel>], iteration_bounds = array<i64: 3>, scalar_prefetch = 0 : i64, scratch_operands = 0 : i64, tpu.core_type = #tpu.core_type<tc>, window_params = [{transform_indices = @transform_0, window_bounds = array<i64: 16, 128>}, {pipeline_mode = #tpu.pipeline_mode<synchronous>, transform_indices = @transform_1, window_bounds = array<i64: 1, 128>}, {pipeline_mode = #tpu.pipeline_mode<synchronous>, transform_indices = @transform_2, window_bounds = array<i64: 1, 128>}, {pipeline_mode = #tpu.pipeline_mode<synchronous>, transform_indices = @transform_3, window_bounds = array<i64: 128, 512>}, {pipeline_mode = #tpu.pipeline_mode<synchronous>, transform_indices = @transform_4, window_bounds = array<i64: 1, 512>}, {pipeline_mode = #tpu.pipeline_mode<synchronous>, transform_indices = @transform_5, window_bounds = array<i64: 512, 128>}, {pipeline_mode = #tpu.pipeline_mode<synchronous>, transform_indices = @transform_6, window_bounds = array<i64: 1, 128>}, {transform_indices = @transform_7, window_bounds = array<i64: 16, 128>}]} {
    %c0 = arith.constant 0 : index
    %c0_0 = arith.constant 0 : index
    %0 = vector.load %arg1[%c0, %c0_0] : memref<16x128xf32, #tpu.memory_space<vmem>>, vector<16x128xf32>
    %c0_1 = arith.constant 0 : index
    %c0_2 = arith.constant 0 : index
    %1 = vector.load %arg2[%c0_1, %c0_2] : memref<1x128xf32, #tpu.memory_space<vmem>>, vector<1x128xf32>
    %c0_3 = arith.constant 0 : index
    %c0_4 = arith.constant 0 : index
    %2 = vector.load %arg3[%c0_3, %c0_4] : memref<1x128xf32, #tpu.memory_space<vmem>>, vector<1x128xf32>
    %cst = arith.constant dense<0.000000e+00> : vector<16xf32>
    %3 = vector.multi_reduction <add>, %0, %cst [1] : vector<16x128xf32> to vector<16xf32>
    %4 = vector.shape_cast %3 : vector<16xf32> to vector<16x1xf32>
    %cst_5 = arith.constant 1.280000e+02 : f32
    %5 = vector.broadcast %cst_5 : f32 to vector<16x1xf32>
    %6 = arith.divf %4, %5 : vector<16x1xf32>
    %7 = vector.broadcast %6 : vector<16x1xf32> to vector<16x128xf32>
    %8 = arith.subf %0, %7 : vector<16x128xf32>
    %9 = arith.mulf %8, %8 : vector<16x128xf32>
    %cst_6 = arith.constant dense<0.000000e+00> : vector<16xf32>
    %10 = vector.multi_reduction <add>, %9, %cst_6 [1] : vector<16x128xf32> to vector<16xf32>
    %11 = vector.shape_cast %10 : vector<16xf32> to vector<16x1xf32>
    %cst_7 = arith.constant 1.280000e+02 : f32
    %12 = vector.broadcast %cst_7 : f32 to vector<16x1xf32>
    %13 = arith.divf %11, %12 : vector<16x1xf32>
    %14 = vector.broadcast %6 : vector<16x1xf32> to vector<16x128xf32>
    %15 = arith.subf %0, %14 : vector<16x128xf32>
    %cst_8 = arith.constant 9.99999997E-7 : f32
    %16 = vector.broadcast %cst_8 : f32 to vector<16x1xf32>
    %17 = arith.addf %13, %16 : vector<16x1xf32>
    %18 = math.rsqrt %17 : vector<16x1xf32>
    %19 = vector.broadcast %18 : vector<16x1xf32> to vector<16x128xf32>
    %20 = arith.mulf %15, %19 : vector<16x128xf32>
    %21 = vector.broadcast %1 : vector<1x128xf32> to vector<16x128xf32>
    %22 = arith.mulf %20, %21 : vector<16x128xf32>
    %23 = vector.broadcast %2 : vector<1x128xf32> to vector<16x128xf32>
    %24 = arith.addf %22, %23 : vector<16x128xf32>
    %25 = arith.truncf %24 : vector<16x128xf32> to vector<16x128xbf16>
    %c0_9 = arith.constant 0 : index
    %c0_10 = arith.constant 0 : index
    %26 = vector.load %arg4[%c0_9, %c0_10] : memref<128x512xbf16, #tpu.memory_space<vmem>>, vector<128x512xbf16>
    %cst_11 = arith.constant dense<0.000000e+00> : vector<16x512xf32>
    %27 = tpu.matmul %25, %26, %cst_11 {dimension_numbers = #tpu.dot_dimension_numbers<[1], [0], [0], [1], [0, 0, 1, 1], [], []>} : vector<16x128xbf16>, vector<128x512xbf16>, vector<16x512xf32> -> vector<16x512xf32>
    %c0_12 = arith.constant 0 : index
    %c0_13 = arith.constant 0 : index
    %28 = vector.load %arg5[%c0_12, %c0_13] : memref<1x512xf32, #tpu.memory_space<vmem>>, vector<1x512xf32>
    %29 = vector.broadcast %28 : vector<1x512xf32> to vector<16x512xf32>
    %30 = arith.addf %27, %29 : vector<16x512xf32>
    %31 = arith.mulf %30, %30 : vector<16x512xf32>
    %32 = arith.mulf %30, %31 : vector<16x512xf32>
    %cst_14 = arith.constant 4.471500e-02 : f32
    %33 = vector.broadcast %cst_14 : f32 to vector<16x512xf32>
    %34 = arith.mulf %33, %32 : vector<16x512xf32>
    %35 = arith.addf %30, %34 : vector<16x512xf32>
    %cst_15 = arith.constant 0.797884583 : f32
    %36 = vector.broadcast %cst_15 : f32 to vector<16x512xf32>
    %37 = arith.mulf %36, %35 : vector<16x512xf32>
    %38 = math.tanh %37 : vector<16x512xf32>
    %cst_16 = arith.constant 1.000000e+00 : f32
    %39 = vector.broadcast %cst_16 : f32 to vector<16x512xf32>
    %40 = arith.addf %39, %38 : vector<16x512xf32>
    %cst_17 = arith.constant 5.000000e-01 : f32
    %41 = vector.broadcast %cst_17 : f32 to vector<16x512xf32>
    %42 = arith.mulf %41, %40 : vector<16x512xf32>
    %43 = arith.mulf %30, %42 : vector<16x512xf32>
    %44 = arith.truncf %43 : vector<16x512xf32> to vector<16x512xbf16>
    %c0_18 = arith.constant 0 : index
    %c0_19 = arith.constant 0 : index
    %45 = vector.load %arg6[%c0_18, %c0_19] : memref<512x128xbf16, #tpu.memory_space<vmem>>, vector<512x128xbf16>
    %cst_20 = arith.constant dense<0.000000e+00> : vector<16x128xf32>
    %46 = tpu.matmul %44, %45, %cst_20 {dimension_numbers = #tpu.dot_dimension_numbers<[1], [0], [0], [1], [0, 0, 1, 1], [], []>} : vector<16x512xbf16>, vector<512x128xbf16>, vector<16x128xf32> -> vector<16x128xf32>
    %c0_21 = arith.constant 0 : index
    %c0_22 = arith.constant 0 : index
    %47 = vector.load %arg7[%c0_21, %c0_22] : memref<1x128xf32, #tpu.memory_space<vmem>>, vector<1x128xf32>
    %48 = vector.broadcast %47 : vector<1x128xf32> to vector<16x128xf32>
    %49 = arith.addf %46, %48 : vector<16x128xf32>
    %50 = arith.addf %0, %49 : vector<16x128xf32>
    %c0_23 = arith.constant 0 : index
    %c0_24 = arith.constant 0 : index
    %51 = vector.load %arg8[%c0_23, %c0_24] : memref<16x128xf32, #tpu.memory_space<vmem>>, vector<16x128xf32>
    tpu.vector_store %arg8[%c0_23, %c0_24], %50 {strides = array<i32>} : memref<16x128xf32, #tpu.memory_space<vmem>>, vector<16x128xf32>,
    return
  }
  func.func @transform_0(%arg0: i32) -> (i32, i32) {
    %c0_i32 = arith.constant 0 : i32
    %c0_i32_0 = arith.constant 0 : i32
    return %arg0, %c0_i32 : i32, i32
  }
  func.func @transform_1(%arg0: i32) -> (i32, i32) {
    %c0_i32 = arith.constant 0 : i32
    %c0_i32_0 = arith.constant 0 : i32
    %c0_i32_1 = arith.constant 0 : i32
    return %c0_i32, %c0_i32_0 : i32, i32
  }
  func.func @transform_2(%arg0: i32) -> (i32, i32) {
    %c0_i32 = arith.constant 0 : i32
    %c0_i32_0 = arith.constant 0 : i32
    %c0_i32_1 = arith.constant 0 : i32
    return %c0_i32, %c0_i32_0 : i32, i32
  }
  func.func @transform_3(%arg0: i32) -> (i32, i32) {
    %c0_i32 = arith.constant 0 : i32
    %c0_i32_0 = arith.constant 0 : i32
    %c0_i32_1 = arith.constant 0 : i32
    return %c0_i32, %c0_i32_0 : i32, i32
  }
  func.func @transform_4(%arg0: i32) -> (i32, i32) {
    %c0_i32 = arith.constant 0 : i32
    %c0_i32_0 = arith.constant 0 : i32
    %c0_i32_1 = arith.constant 0 : i32
    return %c0_i32, %c0_i32_0 : i32, i32
  }
  func.func @transform_5(%arg0: i32) -> (i32, i32) {
    %c0_i32 = arith.constant 0 : i32
    %c0_i32_0 = arith.constant 0 : i32
    %c0_i32_1 = arith.constant 0 : i32
    return %c0_i32, %c0_i32_0 : i32, i32
  }
  func.func @transform_6(%arg0: i32) -> (i32, i32) {
    %c0_i32 = arith.constant 0 : i32
    %c0_i32_0 = arith.constant 0 : i32
    %c0_i32_1 = arith.constant 0 : i32
    return %c0_i32, %c0_i32_0 : i32, i32
  }
  func.func @transform_7(%arg0: i32) -> (i32, i32) {
    %c0_i32 = arith.constant 0 : i32
    %c0_i32_0 = arith.constant 0 : i32
    return %arg0, %c0_i32 : i32, i32
  }
}

module attributes {stable_mosaic.version = 11 : i64} {
  func.func @_layernorm_kernel(%arg0: i32, %arg1: memref<16x128xf32, #tpu.memory_space<vmem>>, %arg2: memref<1x128xf32, #tpu.memory_space<vmem>>, %arg3: memref<1x128xf32, #tpu.memory_space<vmem>>, %arg4: memref<16x128xf32, #tpu.memory_space<vmem>>) attributes {dimension_semantics = [#tpu.dimension_semantics<parallel>], iteration_bounds = array<i64: 3>, scalar_prefetch = 0 : i64, scratch_operands = 0 : i64, tpu.core_type = #tpu.core_type<tc>, window_params = [{transform_indices = @transform_0, window_bounds = array<i64: 16, 128>}, {pipeline_mode = #tpu.pipeline_mode<synchronous>, transform_indices = @transform_1, window_bounds = array<i64: 1, 128>}, {pipeline_mode = #tpu.pipeline_mode<synchronous>, transform_indices = @transform_2, window_bounds = array<i64: 1, 128>}, {transform_indices = @transform_3, window_bounds = array<i64: 16, 128>}]} {
    %c0 = arith.constant 0 : index
    %c0_0 = arith.constant 0 : index
    %0 = vector.load %arg1[%c0, %c0_0] : memref<16x128xf32, #tpu.memory_space<vmem>>, vector<16x128xf32>
    %c0_1 = arith.constant 0 : index
    %c0_2 = arith.constant 0 : index
    %1 = vector.load %arg2[%c0_1, %c0_2] : memref<1x128xf32, #tpu.memory_space<vmem>>, vector<1x128xf32>
    %c0_3 = arith.constant 0 : index
    %c0_4 = arith.constant 0 : index
    %2 = vector.load %arg3[%c0_3, %c0_4] : memref<1x128xf32, #tpu.memory_space<vmem>>, vector<1x128xf32>
    %cst = arith.constant dense<0.000000e+00> : vector<16xf32>
    %3 = vector.multi_reduction <add>, %0, %cst [1] : vector<16x128xf32> to vector<16xf32>
    %4 = vector.shape_cast %3 : vector<16xf32> to vector<16x1xf32>
    %cst_5 = arith.constant 1.280000e+02 : f32
    %5 = vector.broadcast %cst_5 : f32 to vector<16x1xf32>
    %6 = arith.divf %4, %5 : vector<16x1xf32>
    %7 = vector.broadcast %6 : vector<16x1xf32> to vector<16x128xf32>
    %8 = arith.subf %0, %7 : vector<16x128xf32>
    %9 = arith.mulf %8, %8 : vector<16x128xf32>
    %cst_6 = arith.constant dense<0.000000e+00> : vector<16xf32>
    %10 = vector.multi_reduction <add>, %9, %cst_6 [1] : vector<16x128xf32> to vector<16xf32>
    %11 = vector.shape_cast %10 : vector<16xf32> to vector<16x1xf32>
    %cst_7 = arith.constant 1.280000e+02 : f32
    %12 = vector.broadcast %cst_7 : f32 to vector<16x1xf32>
    %13 = arith.divf %11, %12 : vector<16x1xf32>
    %14 = vector.broadcast %6 : vector<16x1xf32> to vector<16x128xf32>
    %15 = arith.subf %0, %14 : vector<16x128xf32>
    %cst_8 = arith.constant 9.99999997E-7 : f32
    %16 = vector.broadcast %cst_8 : f32 to vector<16x1xf32>
    %17 = arith.addf %13, %16 : vector<16x1xf32>
    %18 = math.rsqrt %17 : vector<16x1xf32>
    %19 = vector.broadcast %18 : vector<16x1xf32> to vector<16x128xf32>
    %20 = arith.mulf %15, %19 : vector<16x128xf32>
    %21 = vector.broadcast %1 : vector<1x128xf32> to vector<16x128xf32>
    %22 = arith.mulf %20, %21 : vector<16x128xf32>
    %23 = vector.broadcast %2 : vector<1x128xf32> to vector<16x128xf32>
    %24 = arith.addf %22, %23 : vector<16x128xf32>
    %c0_9 = arith.constant 0 : index
    %c0_10 = arith.constant 0 : index
    %25 = vector.load %arg4[%c0_9, %c0_10] : memref<16x128xf32, #tpu.memory_space<vmem>>, vector<16x128xf32>
    tpu.vector_store %arg4[%c0_9, %c0_10], %24 {strides = array<i32>} : memref<16x128xf32, #tpu.memory_space<vmem>>, vector<16x128xf32>,
    return
  }
  func.func @transform_0(%arg0: i32) -> (i32, i32) {
    %c0_i32 = arith.constant 0 : i32
    %c0_i32_0 = arith.constant 0 : i32
    return %arg0, %c0_i32 : i32, i32
  }
  func.func @transform_1(%arg0: i32) -> (i32, i32) {
    %c0_i32 = arith.constant 0 : i32
    %c0_i32_0 = arith.constant 0 : i32
    %c0_i32_1 = arith.constant 0 : i32
    return %c0_i32, %c0_i32_0 : i32, i32
  }
  func.func @transform_2(%arg0: i32) -> (i32, i32) {
    %c0_i32 = arith.constant 0 : i32
    %c0_i32_0 = arith.constant 0 : i32
    %c0_i32_1 = arith.constant 0 : i32
    return %c0_i32, %c0_i32_0 : i32, i32
  }
  func.func @transform_3(%arg0: i32) -> (i32, i32) {
    %c0_i32 = arith.constant 0 : i32
    %c0_i32_0 = arith.constant 0 : i32
    return %arg0, %c0_i32 : i32, i32
  }
}

</mosaic_0001>

<bundles_post_ra>
// kernel: sat_img_encoder_forward.8
= control target key start
LH: loop header
LB: loop body
LE: loop exit
PB: predicated region body
PF: predicated region fallthrough
CT: control target
= control target key end

     0   :  { %v246_v0 = vmov 0   ;;  %vm130_vm0 = vcmask 523264   ;;  %s366_s1 = inlined_call_operand.vmem [shape: bf16[192,128], index: 1, kind: input, shape index: {}]   ;;  %s367_s0 = inlined_call_operand.vmem [shape: f32[32,192], index: 0, kind: input, shape index: {}]   ;;  %s368_s2 = inlined_call_operand.vmem [shape: f32[1,128], index: 2, kind: input, shape index: {}]   ;;  %s369_s3 = inlined_call_operand.vmem [shape: f32[32,128], index: 3, kind: output, shape index: {}]  }
   0x1   :  { %137 = vmatprep.subr.bf16.mxu0 %v246_v0  ;;  %209 = vmatprep.subr.bf16.mxu1 %v246_v0  ;;  %v234_v1 = vld [vmem:[%s366_s1] sm:$0xff]   ;;  %v235_v2 = vld [vmem:[%s366_s1 + $0x8] sm:$0xff]   ;;  %v236_v3 = vld [vmem:[%s366_s1 + $0x10] sm:$0xff]  }
   0x2   :  { %138 = vmatpush1.bf16.msra.mxu0 %v234_v1  ;;  %221 = vmatpush1.bf16.msra.mxu1 %v234_v1  ;;  %v237_v4 = vld [vmem:[%s366_s1 + $0x18] sm:$0xff]   ;;  %v16_v5 = vld [vmem:[%s367_s0 + $0x8] sm:$0xff]  ;;  %v238_v10 = vld [vmem:[%s366_s1 + $0x20] sm:$0xff]  }
   0x3   :  { %139 = vmatprep.subr.bf16.mxu0 %v246_v0  ;;  %210 = vmatprep.subr.bf16.mxu1 %v246_v0  ;;  %v18_v6 = vld [vmem:[%s367_s0 + $0x18] sm:$0xff]  ;;  %v20_v7 = vld [vmem:[%s367_s0 + $0x28] sm:$0xff]  ;;  %v240_v13 = vld [vmem:[%s366_s1 + $0x30] sm:$0xff]  }
   0x4   :  { %v24_v8 = vpack.c.bf16 %v18_v6, %v16_v5  ;;  %v22_v9 = vld [vmem:[%s367_s0 + $0x38] sm:$0xff]  ;;  %v239_v12 = vld [vmem:[%s366_s1 + $0x28] sm:$0xff]   ;;  %v242_v15 = vld [vmem:[%s366_s1 + $0x40] sm:$0xff]  }
   0x5   :  { %v26_v11 = vpack.c.bf16 %v22_v9, %v20_v7  ;;  %v241_v14 = vld [vmem:[%s366_s1 + $0x38] sm:$0xff]   ;;  %v243_v16 = vld [vmem:[%s366_s1 + $0x48] sm:$0xff]   ;;  %v244_v17 = vld [vmem:[%s366_s1 + $0x50] sm:$0xff]  }
   0x6   :  { %140 = vmatpush1.bf16.msra.mxu0 %v235_v2  ;;  %222 = vmatpush1.bf16.msra.mxu1 %v235_v2  ;;  %v245_v18 = vld [vmem:[%s366_s1 + $0x58] sm:$0xff]   ;;  %v15_v19 = vld [vmem:[%s367_s0] sm:$0xff]  ;;  %v17_v20 = vld [vmem:[%s367_s0 + $0x10] sm:$0xff] }
   0x7   :  { %141 = vmatprep.subr.bf16.mxu0 %v246_v0  ;;  %211 = vmatprep.subr.bf16.mxu1 %v246_v0  ;;  %v19_v21 = vld [vmem:[%s367_s0 + $0x20] sm:$0xff]  ;;  %v21_v22 = vld [vmem:[%s367_s0 + $0x30] sm:$0xff]  ;;  %v23_v23 = vpack.c.bf16 %v17_v20, %v15_v19 }
   0x8   :  { %207 = vmatprep.mubr.msk.bf16.mxu0 %vm130_vm0, %v24_v8  ;;  %208 = vmatprep.mubr.msk.bf16.mxu1 %vm130_vm0, %v26_v11  ;;  %v25_v24 = vpack.c.bf16 %v21_v22, %v19_v21  ;;  %v194_v25 = vld [vmem:[%s368_s2] ss:$0 sm:$0xff] }
   0xa   :  { %142 = vmatpush1.bf16.msra.mxu0 %v236_v3  ;;  %223 = vmatpush1.bf16.msra.mxu1 %v236_v3 }
   0xb   :  { %143 = vmatprep.subr.bf16.mxu0 %v246_v0  ;;  %212 = vmatprep.subr.bf16.mxu1 %v246_v0 }
   0xe   :  { %144 = vmatpush1.bf16.msra.mxu0 %v237_v4  ;;  %224 = vmatpush1.bf16.msra.mxu1 %v237_v4 }
   0xf   :  { %145 = vmatprep.subr.bf16.mxu0 %v246_v0  ;;  %213 = vmatprep.subr.bf16.mxu1 %v246_v0 }
  0x12   :  { %146 = vmatpush1.bf16.msra.mxu0 %v238_v10  ;;  %225 = vmatpush1.bf16.msra.mxu1 %v238_v10 }
  0x13   :  { %147 = vmatprep.subr.bf16.mxu0 %v246_v0  ;;  %214 = vmatprep.subr.bf16.mxu1 %v246_v0 }
  0x16   :  { %148 = vmatpush1.bf16.msra.mxu0 %v239_v12  ;;  %226 = vmatpush1.bf16.msra.mxu1 %v239_v12 }
  0x17   :  { %149 = vmatprep.subr.bf16.mxu0 %v246_v0  ;;  %215 = vmatprep.subr.bf16.mxu1 %v246_v0 }
  0x1a   :  { %150 = vmatpush1.bf16.msra.mxu0 %v240_v13  ;;  %227 = vmatpush1.bf16.msra.mxu1 %v240_v13 }
  0x1b   :  { %151 = vmatprep.subr.bf16.mxu0 %v246_v0  ;;  %216 = vmatprep.subr.bf16.mxu1 %v246_v0 }
  0x1e   :  { %152 = vmatpush1.bf16.msra.mxu0 %v241_v14  ;;  %228 = vmatpush1.bf16.msra.mxu1 %v241_v14 }
  0x1f   :  { %153 = vmatprep.subr.bf16.mxu0 %v246_v0  ;;  %217 = vmatprep.subr.bf16.mxu1 %v246_v0 }
  0x22   :  { %154 = vmatpush1.bf16.msra.mxu0 %v242_v15  ;;  %229 = vmatpush1.bf16.msra.mxu1 %v242_v15 }
  0x23   :  { %155 = vmatprep.subr.bf16.mxu0 %v246_v0  ;;  %218 = vmatprep.subr.bf16.mxu1 %v246_v0 }
  0x26   :  { %156 = vmatpush1.bf16.msra.mxu0 %v243_v16  ;;  %230 = vmatpush1.bf16.msra.mxu1 %v243_v16 }
  0x27   :  { %157 = vmatprep.subr.bf16.mxu0 %v246_v0  ;;  %219 = vmatprep.subr.bf16.mxu1 %v246_v0 }
  0x2a   :  { %158 = vmatpush1.bf16.msra.mxu0 %v244_v17  ;;  %231 = vmatpush1.bf16.msra.mxu1 %v244_v17 }
  0x2b   :  { %159 = vmatprep.subr.bf16.mxu0 %v246_v0  ;;  %220 = vmatprep.subr.bf16.mxu1 %v246_v0 }
  0x2e   :  { %160 = vmatpush1.bf16.msra.mxu0 %v245_v18  ;;  %232 = vmatpush1.bf16.msra.mxu1 %v245_v18 }
  0x31   :  { %170 = vmatmul.mubr.bf16.vlgmr.msra.gmra.mrb[0].mxu0 %v23_v23  ;;  %178 = vmatmul.mubr.bf16.vlgmr.msra.gmra.mrb[0].mxu1 %v25_v24 }
 0x104   :  { %v171_v26 = vpop.f32.mrb[0].mxu0  ;;  %v179_v27 = vpop.f32.mrb[0].mxu1 }
 0x105   :  { %v172_v28 = vadd.f32 %v194_v25, %v171_v26  ;;  %v180_v29 = vadd.f32 %v194_v25, %v179_v27  ;;  %v173_v30 = vpop.f32.mrb[1].mxu0  ;;  %v181_v31 = vpop.f32.mrb[1].mxu1 }
 0x106   :  { %v174_v32 = vpop.f32.mrb[2].mxu0  ;;  %v182_v33 = vpop.f32.mrb[2].mxu1 }
 0x107   :  { %186 = vst [vmem:[%s369_s3] sm:$0xff] %v172_v28  ;;  %188 = vst [vmem:[%s369_s3 + $0x10] sm:$0xff] %v180_v29  ;;  %v175_v34 = vadd.f32 %v194_v25, %v174_v32  ;;  %v183_v35 = vadd.f32 %v194_v25, %v182_v33  ;;  %v176_v36 = vpop.f32.mrb[3].mxu0  ;;  %v184_v37 = vpop.f32.mrb[3].mxu1 }
 0x109   :  { %187 = vst [vmem:[%s369_s3 + $0x8] sm:$0xff] %v175_v34  ;;  %189 = vst [vmem:[%s369_s3 + $0x18] sm:$0xff] %v183_v35 }

// kernel: sat_img_encoder_forward.9
= control target key start
LH: loop header
LB: loop body
LE: loop exit
PB: predicated region body
PF: predicated region fallthrough
CT: control target
= control target key end

     0   :  { %s755_s18 = smov 0   ;;  %s876_s0 = inlined_call_operand.vmem [shape: f32[48,128], index: 0, kind: input, shape index: {}]   ;;  %s877_s1 = inlined_call_operand.vmem [shape: f32[1,128], index: 1, kind: input, shape index: {}]   ;;  %s878_s2 = inlined_call_operand.vmem [shape: f32[1,128], index: 2, kind: input, shape index: {}]   ;;  %s879_s3 = inlined_call_operand.vmem [shape: bf16[128,384], index: 3, kind: input, shape index: {}]   ;;  %s880_s4 = inlined_call_operand.vmem [shape: f32[1,384], index: 4, kind: input, shape index: {}]   ;;  %s881_s5 = inlined_call_operand.vmem [shape: f32[48,384], index: 5, kind: output, shape index: {}]  }
   0x1 LB: > { %s600_s19 = sadd.s32 4294967295, %s720_s18   ;;  %p604_p0 = scmp.ge.s32.totalorder %s720_s18, 1  ;;  %s720_s18 = sphi %s755_s18, %s15_s18  }
   0x2   : > { %p188_p1 = scmp.lt.s32.totalorder %s720_s18, 4 }
   0x4   : > { %p189_p2 = pnand %p604_p0, %p188_p1 }
   0x5   : > { %s605_s20 = sshll.u32 (!%p189_p2), %s600_s19, 1  ;;  %v678_v2 = vld [vmem:[%s879_s3 + $0x4] ss:$12 sps:$4 sm:$0xff] (!%p189_p2)   ;;  %v680_v3 = vld [vmem:[%s879_s3] ss:$12 sps:$4 sm:$0xff] (!%p189_p2)   ;;  %v722_v4 = vmov (!%p189_p2), 0.0   ;;  %v309_v53 = vlaneseq (!%p189_p2) }
   0x6   : > { %192 = sbr.rel (%p189_p2) target bundleno = 552 (0x228), region = 40  ;;  %p218_p3 = scmp.lt.s32.totalorder (!%p189_p2), %s605_s20, 5  ;;  %646 = vmatprep.subr.bf16.mxu1 (!%p189_p2), %v722_v4  ;;  %v681_v5 = vld [vmem:[%s879_s3 + $0x8] ss:$12 sps:$4 sm:$0xff] (!%p189_p2)   ;;  %452 = vmatprep.subr.bf16.mxu0 (!%p189_p2), %v678_v2  ;;  %v684_v15 = vld [vmem:[%s879_s3 + $0x18] ss:$12 sps:$4 sm:$0xff] (!%p189_p2)  }
   0x7   : > { %v682_v6 = vld [vmem:[%s879_s3 + $0x1c] ss:$12 sps:$4 sm:$0xff] (!%p189_p2)   ;;  %453 = vmatpush1.bf16.msra.mxu0 (!%p189_p2), %v680_v3  ;;  %647 = vmatpush3.bf16.msra.mxu1 (!%p189_p2), %v681_v5  ;;  %v685_v16 = vld [vmem:[%s879_s3 + $0x20] ss:$12 sps:$4 sm:$0xff] (!%p189_p2)   ;;  %v689_v19 = vld [vmem:[%s879_s3 + $0x38] ss:$12 sps:$4 sm:$0xff] (!%p189_p2)  }
   0x8   : > { %454 = vmatprep.subr.bf16.mxu0 (!%p189_p2), %v682_v6  ;;  %648 = vmatprep.subr.bf16.mxu1 (!%p189_p2), %v722_v4  ;;  %v686_v17 = vld [vmem:[%s879_s3 + $0x34] ss:$12 sps:$4 sm:$0xff] (!%p189_p2)   ;;  %v688_v18 = vld [vmem:[%s879_s3 + $0x30] ss:$12 sps:$4 sm:$0xff] (!%p189_p2)   ;;  %v690_v20 = vld [vmem:[%s879_s3 + $0x4c] ss:$12 sps:$4 sm:$0xff] (!%p189_p2)  }
   0x9   : > { %v692_v21 = vld [vmem:[%s879_s3 + $0x48] ss:$12 sps:$4 sm:$0xff] (!%p189_p2)   ;;  %v693_v22 = vld [vmem:[%s879_s3 + $0x50] ss:$12 sps:$4 sm:$0xff] (!%p189_p2)   ;;  %v696_v24 = vld [vmem:[%s879_s3 + $0x60] ss:$12 sps:$4 sm:$0xff] (!%p189_p2)  }
   0xa   : > { %v694_v23 = vld [vmem:[%s879_s3 + $0x64] ss:$12 sps:$4 sm:$0xff] (!%p189_p2)   ;;  %v697_v25 = vld [vmem:[%s879_s3 + $0x68] ss:$12 sps:$4 sm:$0xff] (!%p189_p2)   ;;  %v701_v28 = vld [vmem:[%s879_s3 + $0x80] ss:$12 sps:$4 sm:$0xff] (!%p189_p2)  }
   0xb   : > { %455 = vmatpush1.bf16.msra.mxu0 (!%p189_p2), %v684_v15  ;;  %649 = vmatpush3.bf16.msra.mxu1 (!%p189_p2), %v685_v16  ;;  %v698_v26 = vld [vmem:[%s879_s3 + $0x7c] ss:$12 sps:$4 sm:$0xff] (!%p189_p2)   ;;  %v700_v27 = vld [vmem:[%s879_s3 + $0x78] ss:$12 sps:$4 sm:$0xff] (!%p189_p2)   ;;  %v702_v29 = vld [vmem:[%s879_s3 + $0x94] ss:$12 sps:$4 sm:$0xff] (!%p189_p2)  }
   0xc   : > { %650 = vmatprep.subr.bf16.mxu1 (!%p189_p2), %v722_v4  ;;  %456 = vmatprep.subr.bf16.mxu0 (!%p189_p2), %v686_v17  ;;  %v723_v30 = vmov (!%p189_p2), 0   ;;  %vm724_vm0 = vmmov (!%p189_p2), 0   ;;  %v704_v31 = vld [vmem:[%s879_s3 + $0x90] ss:$12 sps:$4 sm:$0xff] (!%p189_p2)   ;;  %v705_v32 = vld [vmem:[%s879_s3 + $0x98] ss:$12 sps:$4 sm:$0xff] (!%p189_p2)  }
   0xd   : > { %s883_s20 = smov (!%p218_p3, %s605_s20), 5  ;;  %484 = vmatprep.mubr.bf16.mxu0 %v723_v30  ;;  %662 = vmatprep.mubr.msk.bf16.mxu1 %vm724_vm0, %v722_v4  ;;  %v706_v33 = vld [vmem:[%s879_s3 + $0xac] ss:$12 sps:$4 sm:$0xff]   ;;  %v708_v34 = vld [vmem:[%s879_s3 + $0xa8] ss:$12 sps:$4 sm:$0xff]   ;;  %v310_v54 = vshrl.u32 %v309_v53, 7 }
   0xe   : > { %s606_s21 = sshll.u32 %s883_s20, 3  ;;  %v709_v35 = vld [vmem:[%s879_s3 + $0xb0] ss:$12 sps:$4 sm:$0xff]   ;;  %v609_v44 = vld [vmem:[%s877_s1] ss:$0 sm:$0xff]  ;;  %s666_s8 = smul.u32 24, %s883_s20 }
   0xf   : > { %s221_s24 = scalar_lea.vmem %s876_s0, %s606_s21  ;;  %457 = vmatpush1.bf16.msra.mxu0 %v688_v18  ;;  %651 = vmatpush3.bf16.msra.mxu1 %v689_v19  ;;  %v610_v48 = vld [vmem:[%s878_s2] ss:$0 sm:$0xff]  ;;  %v311_v55 = vsub.s32 0, %v310_v54  ;;  %v319_v56 = vsub.s32 2, %v310_v54  ;;  %v315_v58 = vsub.s32 1, %v310_v54 }
  0x10   : > { %v231_v0 = vld [vmem:[%s221_s24] sm:$0xff]  ;;  %v232_v1 = vld [vmem:[%s221_s24 + $0x8] sm:$0xff]  ;;  %652 = vmatprep.subr.bf16.mxu1 %v722_v4  ;;  %458 = vmatprep.subr.bf16.mxu0 %v690_v20  ;;  %s228_s11 = scalar_lea.vmem %s881_s5, %s666_s8 }
  0x11   : > { %235 = vadd.xlane.f32.xlu0 %v231_v0  ;;  %v307_v57 = vld [vmem:[%s880_s4] sm:$0x7] }
  0x12   : > { %v312_v59 = vrot.slane %v307_v57, %v311_v55  ;;  %v320_v60 = vrot.slane %v307_v57, %v319_v56  ;;  %v316_v61 = vrot.slane %v307_v57, %v315_v58 }
  0x13   : > { %459 = vmatpush1.bf16.msra.mxu0 %v692_v21  ;;  %653 = vmatpush3.bf16.msra.mxu1 %v693_v22 }
  0x14   : > { %654 = vmatprep.subr.bf16.mxu1 %v722_v4  ;;  %460 = vmatprep.subr.bf16.mxu0 %v694_v23 }
  0x15   : > { %237 = vadd.xlane.f32.xlu0 %v232_v1 }
  0x17   : > { %461 = vmatpush1.bf16.msra.mxu0 %v696_v24  ;;  %655 = vmatpush3.bf16.msra.mxu1 %v697_v25 }
  0x18   : > { %462 = vmatprep.subr.bf16.mxu0 %v698_v26  ;;  %656 = vmatprep.subr.bf16.mxu1 %v722_v4 }
  0x1b   : > { %463 = vmatpush1.bf16.msra.mxu0 %v700_v27  ;;  %657 = vmatpush3.bf16.msra.mxu1 %v701_v28 }
  0x1c   : > { %464 = vmatprep.subr.bf16.mxu0 %v702_v29  ;;  %658 = vmatprep.subr.bf16.mxu1 %v722_v4 }
  0x1f   : > { %465 = vmatpush1.bf16.msra.mxu0 %v704_v31  ;;  %659 = vmatpush3.bf16.msra.mxu1 %v705_v32 }
  0x20   : > { %466 = vmatprep.subr.bf16.mxu0 %v706_v33  ;;  %660 = vmatprep.subr.bf16.mxu1 %v722_v4 }
  0x23   : > { %467 = vmatpush1.bf16.msra.mxu0 %v708_v34  ;;  %661 = vmatpush3.bf16.msra.mxu1 %v709_v35 }
  0x9e   : > { %v236_v7 = vpop.xlane.xlu0 %235 }
  0x9f   : > { %v240_v8 = vmul.f32 0.0078125, %v236_v7 }
  0xa1   : > { %v783_v9 = vsub.f32 %v231_v0, %v240_v8 }
  0xa2   : > { %v238_v10 = vpop.xlane.xlu0 %237 }
  0xa3   : > { %v241_v11 = vmul.f32 0.0078125, %v238_v10  ;;  %v244_v12 = vmul.f32 %v783_v9, %v783_v9 }
  0xa5   : > { %v787_v13 = vsub.f32 %v232_v1, %v241_v11  ;;  %246 = vadd.xlane.f32.xlu1 %v244_v12 }
  0xa7   : > { %v245_v14 = vmul.f32 %v787_v13, %v787_v13 }
  0xa9   : > { %248 = vadd.xlane.f32.xlu1 %v245_v14 }
 0x132   : > { %v247_v36 = vpop.xlane.xlu1 %246 }
 0x133   : > { %v250_v37 = vmul.f32 0.0078125, %v247_v36 }
 0x135   : > { %v252_v38 = vadd.f32 1e-06, %v250_v37 }
 0x136   : > { %v249_v39 = vpop.xlane.xlu1 %248 }
 0x137   : > { %710 = vrsqrt.f32 %v252_v38  ;;  %v251_v40 = vmul.f32 0.0078125, %v249_v39 }
 0x139   : > { %v253_v41 = vadd.f32 1e-06, %v251_v40 }
 0x13b   : > { %712 = vrsqrt.f32 %v253_v41 }
 0x141   : > { %v711_v42 = vpop.eup %710 }
 0x142   : > { %v256_v43 = vmul.f32 %v711_v42, %v783_v9 }
 0x144   : > { %v264_v47 = vmul.f32 %v609_v44, %v256_v43 }
 0x145   : > { %v713_v45 = vpop.eup %712 }
 0x146   : > { %v257_v46 = vmul.f32 %v713_v45, %v787_v13  ;;  %v272_v50 = vadd.f32 %v610_v48, %v264_v47 }
 0x148   : > { %v265_v49 = vmul.f32 %v609_v44, %v257_v46 }
 0x14a   : > { %v273_v51 = vadd.f32 %v610_v48, %v265_v49 }
 0x14c   : > { %v274_v52 = vpack.c.bf16 %v273_v51, %v272_v50 }
 0x14e   : > { %485 = vmatmul.mubr.bf16.vlgmr.msra.gmra.mrb[0].mxu0 %v274_v52  ;;  %663 = vmatmul.mubr.bf16.vlgmr.msra.gmra.mrb[0].mxu1 %v274_v52 }
 0x221   : > { %v486_v62 = vpop.f32.mrb[0].mxu0  ;;  %v529_v63 = vpop.f32.mrb[0].mxu1 }
 0x222   : > { %v487_v0 = vadd.f32 %v486_v62, %v312_v59  ;;  %v530_v1 = vadd.f32 %v529_v63, %v320_v60  ;;  %v488_v2 = vpop.f32.mrb[1].mxu0  ;;  %v664_v3 = vpop.f32.mrb[1].mxu1 }
 0x223   : > { %v489_v4 = vadd.f32 %v488_v2, %v316_v61  ;;  %v490_v5 = vpop.f32.mrb[2].mxu0  ;;  %v532_v6 = vpop.f32.mrb[2].mxu1 }
 0x224   : > { %536 = vst [vmem:[%s228_s11] sm:$0xff] %v487_v0  ;;  %538 = vst [vmem:[%s228_s11 + $0x10] sm:$0xff] %v530_v1  ;;  %v491_v7 = vadd.f32 %v490_v5, %v312_v59  ;;  %v533_v8 = vadd.f32 %v532_v6, %v320_v60  ;;  %v492_v9 = vpop.f32.mrb[3].mxu0  ;;  %v665_v10 = vpop.f32.mrb[3].mxu1 }
 0x225   : > { %537 = vst [vmem:[%s228_s11 + $0x8] sm:$0xff] %v489_v4  ;;  %v493_v11 = vadd.f32 %v492_v9, %v316_v61 }
 0x226   : > { %539 = vst [vmem:[%s228_s11 + $0x18] sm:$0xff] %v491_v7  ;;  %541 = vst [vmem:[%s228_s11 + $0x28] sm:$0xff] %v533_v8 }
 0x227   : > { %540 = vst [vmem:[%s228_s11 + $0x20] sm:$0xff] %v493_v11 }
 0x228 PF: > { %s15_s18 = sadd.s32 1, %s720_s18  }
 0x229   : > { %p12_p4 = scmp.ge.s32.totalorder %s15_s18, 5  }
 0x22b   :  { %14 = sbr.rel (!%p12_p4) target bundleno = 1 (0x1), region = 70 }

// kernel: sat_img_encoder_forward.10
= control target key start
LH: loop header
LB: loop body
LE: loop exit
PB: predicated region body
PF: predicated region fallthrough
CT: control target
= control target key end

     0   :  { %s1583_s15 = smov 0   ;;  %s1807_s0 = inlined_call_operand.vmem [shape: f32[2,24,384], index: 0, kind: input, shape index: {}]   ;;  %s1808_s1 = inlined_call_operand.vmem [shape: bf16[128,128], index: 1, kind: input, shape index: {}]   ;;  %s1809_s2 = inlined_call_operand.vmem [shape: f32[1,128], index: 2, kind: input, shape index: {}]   ;;  %s1810_s3 = inlined_call_operand.vmem [shape: f32[2,24,128], index: 3, kind: input, shape index: {}]   ;;  %s1811_s4 = inlined_call_operand.vmem [shape: f32[2,24,128], index: 4, kind: output, shape index: {}]  }
   0x1 LB: > { %s1277_s16 = sadd.s32 4294967295, %s1552_s15   ;;  %p1281_p0 = scmp.ge.s32.totalorder %s1552_s15, 1  ;;  %s1552_s15 = sphi %s1583_s15, %s14_s15  }
   0x2   : > { %p172_p1 = scmp.lt.s32.totalorder %s1552_s15, 3 }
   0x4   : > { %p173_p2 = pnand %p1281_p0, %p172_p1 }
   0x5   : > { %p203_p3 = scmp.lt.s32.totalorder (!%p173_p2), %s1277_s16, 1  ;;  %vm241_vm0 = vcmask (!%p173_p2), 261120   ;;  %v231_v15 = vlaneseq (!%p173_p2)  ;;  %v1554_v17 = vmov (!%p173_p2), -1e+30   ;;  %vm302_vm2 = vcmask (!%p173_p2), 195584   ;;  %s1555_s21 = smov (!%p173_p2), 96  }
   0x6   : > { %176 = sbr.rel (%p173_p2) target bundleno = 2563 (0xa03), region = 36  ;;  %vm344_vm3 = vcmask (!%p173_p2), 1043456   ;;  %s1556_s26 = smov (!%p173_p2), 64  }
   0x7   : > { %v232_v16 = vand.u32 (!%p173_p2), 127, %v231_v15  ;;  %s1557_s5 = smov (!%p173_p2), 32  }
   0x9   : > { %vm233_vm1 = vcmp.lt.s32.totalorder (!%p173_p2), %v232_v16, 17 }
   0xa   : > { %v1625_v18 = vsel (!%p173_p2), %vm233_vm1, 0.0, %v1554_v17 }
   0xd   : > { %s1813_s16 = smov (!%p203_p3, %s1277_s16), 1 }
   0xe   : > { %s1476_s17 = smul.u32 72, %s1813_s16 }
   0xf   : > { %s1477_s14 = smul.u32 24, %s1813_s16 }
  0x10   : > { %s1597_s20 = scalar_lea.vmem %s1807_s0, %s1476_s17 }
  0x11   : > { %v220_v0 = vld [vmem:[%s1597_s20 + $0x8] sm:$0xff]  ;;  %v223_v1 = vld [vmem:[%s1597_s20 + $0x20] sm:$0xff]  ;;  %v226_v2 = vld [vmem:[%s1597_s20 + $0x38] sm:$0xff]  ;;  %s212_s19 = scalar_lea.vmem %s1810_s3, %s1477_s14  ;;  %s217_s23 = scalar_lea.vmem %s1811_s4, %s1477_s14 }
  0x12   : > { %v1602_v3 = vpack.c.bf16 %v223_v1, %v220_v0  ;;  %v1604_v4 = vpack.c.bf16 %v226_v2, %v226_v2  ;;  %v219_v5 = vld [vmem:[%s1597_s20] sm:$0xff]  ;;  %v222_v6 = vld [vmem:[%s1597_s20 + $0x18] sm:$0xff]  ;;  %v225_v11 = vld [vmem:[%s1597_s20 + $0x30] sm:$0xff] }
  0x13   : > { %v228_v7 = vmul.f32 0.17677669, %v219_v5  ;;  %v229_v8 = vmul.f32 0.17677669, %v222_v6  ;;  %v230_v13 = vmul.f32 0.17677669, %v225_v11 }
  0x14   : > { %1464 = vmatprep.subr.msk.bf16.mxu0 %vm241_vm0, %v1602_v3  ;;  %v249_v9 = vsel %vm241_vm0, %v1602_v3, 0  ;;  %v252_v12 = vsel %vm241_vm0, %v1604_v4, 0  ;;  %v221_v44 = vld [vmem:[%s1597_s20 + $0x10] sm:$0xff]  ;;  %v224_v45 = vld [vmem:[%s1597_s20 + $0x28] sm:$0xff]  ;;  %v227_v47 = vld [vmem:[%s1597_s20 + $0x40] sm:$0xff] }
  0x15   : > { %1369 = vmatpush3.bf16.xpose.msra.mxu0 %v249_v9  ;;  %v1612_v10 = vpack.c.bf16 %v229_v8, %v228_v7  ;;  %v1621_v14 = vpack.c.bf16 %v230_v13, %v230_v13  ;;  %v1638_v46 = vpack.c.bf16 %v224_v45, %v221_v44  ;;  %v1641_v48 = vpack.c.bf16 %v227_v47, %v227_v47  ;;  %v1490_v2 = vld [vmem:[%s1808_s1] sm:$0xff]   ;;  %v1491_v6 = vld [vmem:[%s1808_s1 + $0x8] sm:$0xff]  }
  0x16   : > { %1465 = vmatprep.subr.msk.bf16.mxu0 %vm241_vm0, %v1604_v4 }
  0x17   : > { %1372 = vmatprep.mubr.msk.bf16.mxu0 %vm241_vm0, %v1612_v10  ;;  %1376 = vmatprep.subr.bf16.mxu1 %v1638_v46  ;;  %v346_v49 = vsel %vm344_vm3, %v1641_v48, 0 }
  0x18   : > { %1377 = vmatpush3.bf16.msra.mxu1 %v1638_v46 }
  0x19   : > { %1466 = vmatprep.subr.msk.bf16.mxu1 %vm344_vm3, %v1641_v48 }
  0x1c   : > { %1379 = vmatpush3.bf16.msra.mxu1 %v346_v49 }
  0x1d   : > { %1371 = vmatpush3.bf16.xpose.msra.mxu0 %v252_v12 }
  0x24   : > { %1373 = vmatmul.mubr.msk.bf16.vlgmr.msra.gmra.mrb[0].mxu0 %vm241_vm0, %v1621_v14 }
  0xf7   : > { %v1374_v19 = vpop.f32.mrb[0].mxu0 }
  0xf8   : > { %v297_v20 = vadd.f32 %v1374_v19, %v1625_v18  ;;  %v288_v21 = vpop.f32.mrb[1].mxu0 }
  0xf9   : > { %v289_v22 = vadd.f32 %v288_v21, %v1625_v18  ;;  %v1375_v23 = vpop.f32.mrb[2].mxu0 }
  0xfa   : > { %v291_v24 = vpop.f32.mrb[3].mxu0  ;;  %v309_v25 = vsel %vm302_vm2, %v297_v20, -inf }
  0xfb   : > { %v292_v26 = vadd.f32 %v291_v24, %v1625_v18  ;;  %310 = vmax.xlane.f32.xlu1 %v309_v25  ;;  %v303_v27 = vsel %vm302_vm2, %v289_v22, -inf }
  0xfc   : > { %304 = vmax.xlane.f32.xlu0 %v303_v27 }
  0xfd   : > { %v306_v28 = vsel %vm302_vm2, %v292_v26, -inf }
 0x100   : > { %307 = vmax.xlane.f32.xlu0 %v306_v28 }
 0x188   : > { %v311_v29 = vpop.xlane.xlu1 %310 }
 0x189   : > { %v314_v30 = vsub.f32 %v297_v20, %v311_v29  ;;  %v305_v31 = vpop.xlane.xlu0 %304 }
 0x18a   : > { %v312_v32 = vsub.f32 %v289_v22, %v305_v31 }
 0x18b   : > { %v319_v33 = vmul.f32 1.442695, %v314_v30 }
 0x18c   : > { %v315_v34 = vmul.f32 1.442695, %v312_v32 }
 0x18d   : > { %v308_v35 = vpop.xlane.xlu0 %307 }
 0x18e   : > { %1498 = vpow2.f32 %v315_v34  ;;  %v313_v36 = vsub.f32 %v292_v26, %v308_v35 }
 0x18f   : > { %1500 = vpow2.f32 %v319_v33 }
 0x190   : > { %v317_v37 = vmul.f32 1.442695, %v313_v36 }
 0x192   : > { %1502 = vpow2.f32 %v317_v37 }
 0x198   : > { %v1499_v38 = vpop.eup %1498 }
 0x199   : > { %v321_v39 = vsel %vm302_vm2, %v1499_v38, 0.0  ;;  %v1501_v40 = vpop.eup %1500 }
 0x19a   : > { %322 = vadd.xlane.f32.xlu1 %v321_v39  ;;  %v327_v42 = vsel %vm302_vm2, %v1501_v40, 0.0 }
 0x19c   : > { %v1503_v41 = vpop.eup %1502 }
 0x19d   : > { %v324_v43 = vsel %vm302_vm2, %v1503_v41, 0.0 }
 0x19e   : > { %328 = vadd.xlane.f32.xlu1 %v327_v42  ;;  %325 = vadd.xlane.f32.xlu0 %v324_v43 }
 0x1af   : > { %412 = vrot.lane.b32.xlu1 %v1604_v4, %s1555_s21 }
 0x1b3   : > { %404 = vrot.lane.b32.xlu1 %v1612_v10, %s1555_s21 }
 0x1b4   : > { %410 = vrot.lane.b32.xlu0 %v1602_v3, %s1555_s21 }
 0x1b7   : > { %406 = vrot.lane.b32.xlu1 %v1621_v14, %s1555_s21 }
 0x227   : > { %v323_v50 = vpop.xlane.xlu1 %322 }
 0x228   : > { %1504 = vrcp.f32 %v323_v50 }
 0x22b   : > { %v329_v51 = vpop.xlane.xlu1 %328  ;;  %v326_v52 = vpop.xlane.xlu0 %325 }
 0x22c   : > { %1506 = vrcp.f32 %v329_v51 }
 0x22d   : > { %1508 = vrcp.f32 %v326_v52 }
 0x22f   : > { %v411_v53 = vpop.permute.xlu0 %410  ;;  %v413_v55 = vpop.permute.xlu1 %412 }
 0x230   : > { %1467 = vmatprep.subr.msk.bf16.mxu1 %vm241_vm0, %v411_v53  ;;  %v421_v63 = vsel %vm241_vm0, %v411_v53, 0  ;;  %v424_v1 = vsel %vm241_vm0, %v413_v55, 0  ;;  %v1492_v53 = vld [vmem:[%s1808_s1 + $0x10] sm:$0xff]  }
 0x232   : > { %v1505_v54 = vpop.eup %1504 }
 0x233   : > { %v333_v59 = vmul.f32 %v1505_v54, %v1499_v38  ;;  %v405_v0 = vpop.permute.xlu1 %404 }
 0x236   : > { %v1507_v56 = vpop.eup %1506 }
 0x237   : > { %v1509_v57 = vpop.eup %1508  ;;  %v335_v58 = vmul.f32 %v1507_v56, %v1501_v40  ;;  %v407_v5 = vpop.permute.xlu1 %406 }
 0x238   : > { %v334_v60 = vmul.f32 %v1509_v57, %v1503_v41 }
 0x239   : > { %v337_v61 = vpack.c.bf16 %v335_v58, %v335_v58 }
 0x23a   : > { %v336_v62 = vpack.c.bf16 %v334_v60, %v333_v59 }
 0x23c   : > { %1380 = vmatprep.mubr.msk.bf16.mxu1 %vm302_vm2, %v336_v62  ;;  %v1493_v62 = vld [vmem:[%s1808_s1 + $0x18] sm:$0xff]  }
 0x23d   : > { %1381 = vmatmul.mubr.msk.bf16.vlgmr.msra.gmra.mrb[0].mxu1 %vm302_vm2, %v337_v61 }
 0x23e   : > { %1385 = vmatpush3.bf16.xpose.msra.mxu1 %v421_v63  ;;  %1388 = vmatprep.mubr.msk.bf16.mxu1 %vm241_vm0, %v405_v0 }
 0x23f   : > { %1468 = vmatprep.subr.msk.bf16.mxu1 %vm241_vm0, %v413_v55 }
 0x246   : > { %1387 = vmatpush3.bf16.xpose.msra.mxu1 %v424_v1 }
 0x247   : > { %1408 = vmatprep.subr.bf16.mxu1 %v1490_v2 }
 0x24d   : > { %1389 = vmatmul.mubr.msk.bf16.vlgmr.msra.gmra.mrb[4].mxu1 %vm241_vm0, %v407_v5 }
 0x24e   : > { %1409 = vmatpush3.bf16.msra.mxu1 %v1490_v2 }
 0x24f   : > { %1410 = vmatprep.subr.bf16.mxu1 %v1491_v6 }
 0x252   : > { %1411 = vmatpush3.bf16.msra.mxu1 %v1491_v6 }
 0x310   : > { %v1382_v7 = vpop.f32.mrb[0].mxu1 }
 0x311   : > { %v382_v8 = vpop.f32.mrb[1].mxu1  ;;  %v397_v13 = vpack.c.bf16 %v1382_v7, %v1382_v7 }
 0x312   : > { %v1383_v9 = vpop.f32.mrb[2].mxu1 }
 0x313   : > { %v385_v11 = vpop.f32.mrb[3].mxu1 }
 0x314   : > { %v396_v12 = vpack.c.bf16 %v385_v11, %v382_v8 }
 0x316   : > { %1412 = vmatprep.mubr.msk.bf16.mxu1 %vm241_vm0, %v396_v12 }
 0x317   : > { %1413 = vmatmul.mubr.msk.bf16.vlgmr.msra.gmra.mrb[8].mxu1 %vm241_vm0, %v397_v13 }
 0x320   : > { %v1390_v15 = vpop.f32.mrb[4].mxu1 }
 0x321   : > { %v460_v16 = vpop.f32.mrb[5].mxu1  ;;  %v469_v21 = vadd.f32 %v1390_v15, %v1625_v18 }
 0x322   : > { %v461_v17 = vadd.f32 %v460_v16, %v1625_v18  ;;  %v1391_v19 = vpop.f32.mrb[6].mxu1 }
 0x323   : > { %v463_v20 = vpop.f32.mrb[7].mxu1  ;;  %v480_v25 = vsel %vm302_vm2, %v469_v21, -inf }
 0x324   : > { %v464_v22 = vadd.f32 %v463_v20, %v1625_v18  ;;  %v474_v23 = vsel %vm302_vm2, %v461_v17, -inf }
 0x325   : > { %475 = vmax.xlane.f32.xlu0 %v474_v23 }
 0x326   : > { %v477_v24 = vsel %vm302_vm2, %v464_v22, -inf }
 0x327   : > { %478 = vmax.xlane.f32.xlu1 %v477_v24 }
 0x329   : > { %481 = vmax.xlane.f32.xlu0 %v480_v25 }
 0x3b2   : > { %v476_v26 = vpop.xlane.xlu0 %475 }
 0x3b3   : > { %v483_v27 = vsub.f32 %v461_v17, %v476_v26 }
 0x3b4   : > { %v479_v28 = vpop.xlane.xlu1 %478 }
 0x3b5   : > { %v486_v29 = vmul.f32 1.442695, %v483_v27  ;;  %v484_v30 = vsub.f32 %v464_v22, %v479_v28 }
 0x3b6   : > { %v482_v31 = vpop.xlane.xlu0 %481 }
 0x3b7   : > { %1510 = vpow2.f32 %v486_v29  ;;  %v488_v32 = vmul.f32 1.442695, %v484_v30  ;;  %v485_v33 = vsub.f32 %v469_v21, %v482_v31 }
 0x3b9   : > { %1512 = vpow2.f32 %v488_v32  ;;  %v490_v34 = vmul.f32 1.442695, %v485_v33 }
 0x3bb   : > { %1514 = vpow2.f32 %v490_v34 }
 0x3c1   : > { %v1511_v35 = vpop.eup %1510 }
 0x3c2   : > { %v492_v36 = vsel %vm302_vm2, %v1511_v35, 0.0 }
 0x3c3   : > { %v1513_v37 = vpop.eup %1512  ;;  %493 = vadd.xlane.f32.xlu0 %v492_v36 }
 0x3c4   : > { %v495_v39 = vsel %vm302_vm2, %v1513_v37, 0.0 }
 0x3c5   : > { %v1515_v38 = vpop.eup %1514 }
 0x3c6   : > { %v498_v40 = vsel %vm302_vm2, %v1515_v38, 0.0 }
 0x3c7   : > { %496 = vadd.xlane.f32.xlu0 %v495_v39  ;;  %499 = vadd.xlane.f32.xlu1 %v498_v40 }
 0x3d8   : > { %513 = vrot.lane.b32.xlu1 %v1641_v48, %s1555_s21 }
 0x3dc   : > { %715 = vrot.lane.b32.xlu1 %v1602_v3, %s1556_s26 }
 0x3dd   : > { %511 = vrot.lane.b32.xlu0 %v1638_v46, %s1555_s21 }
 0x3e0   : > { %717 = vrot.lane.b32.xlu1 %v1604_v4, %s1556_s26 }
 0x3e1   : > { %711 = vrot.lane.b32.xlu0 %v1612_v10, %s1556_s26 }
 0x3e4   : > { %713 = vrot.lane.b32.xlu1 %v1621_v14, %s1556_s26 }
 0x3e5   : > { %955 = vrot.lane.b32.xlu0 %v1602_v3, %s1557_s5 }
 0x3e8   : > { %957 = vrot.lane.b32.xlu1 %v1604_v4, %s1557_s5 }
 0x3e9   : > { %951 = vrot.lane.b32.xlu0 %v1612_v10, %s1557_s5 }
 0x3ea   : > { %v1690_v41 = vpop.f32.mrb[8].mxu1 }
 0x3eb   : > { %v1692_v42 = vpop.f32.mrb[9].mxu1 }
 0x3ec   : > { %v1415_v43 = vpop.f32.mrb[10].mxu1  ;;  %953 = vrot.lane.b32.xlu1 %v1621_v14, %s1557_s5 }
 0x3ed   : > { %v1696_v44 = vpop.f32.mrb[11].mxu1 }
 0x450   : > { %v494_v45 = vpop.xlane.xlu0 %493 }
 0x451   : > { %1516 = vrcp.f32 %v494_v45 }
 0x454   : > { %v500_v47 = vpop.xlane.xlu1 %499  ;;  %v497_v49 = vpop.xlane.xlu0 %496 }
 0x455   : > { %1518 = vrcp.f32 %v500_v47 }
 0x456   : > { %1520 = vrcp.f32 %v497_v49 }
 0x458   : > { %v512_v50 = vpop.permute.xlu0 %511  ;;  %v514_v51 = vpop.permute.xlu1 %513 }
 0x459   : > { %1392 = vmatprep.subr.bf16.mxu0 %v512_v50  ;;  %v523_v52 = vsel %vm344_vm3, %v514_v51, 0 }
 0x45a   : > { %1393 = vmatpush3.bf16.msra.mxu0 %v512_v50 }
 0x45b   : > { %1469 = vmatprep.subr.msk.bf16.mxu0 %vm344_vm3, %v514_v51  ;;  %v1517_v54 = vpop.eup %1516 }
 0x45c   : > { %v504_v58 = vmul.f32 %v1517_v54, %v1511_v35  ;;  %v716_v63 = vpop.permute.xlu1 %715  ;;  %v712_v9 = vpop.permute.xlu0 %711 }
 0x45d   : > { %v726_v8 = vsel %vm241_vm0, %v716_v63, 0 }
 0x45e   : > { %1395 = vmatpush3.bf16.msra.mxu0 %v523_v52 }
 0x45f   : > { %v1519_v55 = vpop.eup %1518  ;;  %1400 = vmatprep.subr.bf16.mxu0 %v1492_v53 }
 0x460   : > { %v1521_v56 = vpop.eup %1520  ;;  %v506_v57 = vmul.f32 %v1519_v55, %v1515_v38  ;;  %v718_v3 = vpop.permute.xlu1 %717 }
 0x461   : > { %v505_v59 = vmul.f32 %v1521_v56, %v1513_v37  ;;  %v729_v4 = vsel %vm241_vm0, %v718_v3, 0  ;;  %v956_v14 = vpop.permute.xlu0 %955 }
 0x462   : > { %v508_v60 = vpack.c.bf16 %v506_v57, %v506_v57  ;;  %v966_v11 = vsel %vm241_vm0, %v956_v14, 0 }
 0x463   : > { %v507_v61 = vpack.c.bf16 %v505_v59, %v504_v58 }
 0x464   : > { %v714_v10 = vpop.permute.xlu1 %713 }
 0x465   : > { %1396 = vmatprep.mubr.msk.bf16.mxu0 %vm302_vm2, %v507_v61  ;;  %v952_v15 = vpop.permute.xlu0 %951 }
 0x466   : > { %1397 = vmatmul.mubr.msk.bf16.vlgmr.msra.gmra.mrb[4].mxu0 %vm302_vm2, %v508_v60 }
 0x467   : > { %1401 = vmatpush3.bf16.msra.mxu0 %v1492_v53 }
 0x468   : > { %1402 = vmatprep.subr.bf16.mxu0 %v1493_v62  ;;  %v958_v12 = vpop.permute.xlu1 %957 }
 0x469   : > { %v969_v13 = vsel %vm241_vm0, %v958_v12, 0 }
 0x46b   : > { %1403 = vmatpush3.bf16.msra.mxu0 %v1493_v62 }
 0x46c   : > { %1470 = vmatprep.subr.msk.bf16.mxu0 %vm241_vm0, %v716_v63  ;;  %v954_v16 = vpop.permute.xlu1 %953 }
 0x539   : > { %v1398_v0 = vpop.f32.mrb[4].mxu0 }
 0x53a   : > { %v559_v1 = vpop.f32.mrb[5].mxu0  ;;  %v574_v7 = vpack.c.bf16 %v1398_v0, %v1398_v0 }
 0x53b   : > { %v1399_v2 = vpop.f32.mrb[6].mxu0 }
 0x53c   : > { %v562_v5 = vpop.f32.mrb[7].mxu0 }
 0x53d   : > { %v573_v6 = vpack.c.bf16 %v562_v5, %v559_v1 }
 0x53f   : > { %1404 = vmatprep.mubr.msk.bf16.mxu0 %vm241_vm0, %v573_v6 }
 0x540   : > { %1405 = vmatmul.mubr.msk.bf16.vlgmr.msra.gmra.mrb[8].mxu0 %vm241_vm0, %v574_v7 }
 0x541   : > { %1417 = vmatpush3.bf16.xpose.msra.mxu0 %v726_v8  ;;  %1420 = vmatprep.mubr.msk.bf16.mxu0 %vm241_vm0, %v712_v9 }
 0x542   : > { %1471 = vmatprep.subr.msk.bf16.mxu0 %vm241_vm0, %v718_v3 }
 0x549   : > { %1419 = vmatpush3.bf16.xpose.msra.mxu0 %v729_v4 }
 0x54a   : > { %1473 = vmatprep.subr.msk.bf16.mxu0 %vm241_vm0, %v956_v14 }
 0x550   : > { %1421 = vmatmul.mubr.msk.bf16.vlgmr.msra.gmra.mrb[12].mxu0 %vm241_vm0, %v714_v10 }
 0x551   : > { %1441 = vmatpush3.bf16.xpose.msra.mxu0 %v966_v11  ;;  %1444 = vmatprep.mubr.msk.bf16.mxu0 %vm241_vm0, %v952_v15 }
 0x552   : > { %1474 = vmatprep.subr.msk.bf16.mxu0 %vm241_vm0, %v958_v12 }
 0x559   : > { %1443 = vmatpush3.bf16.xpose.msra.mxu0 %v969_v13 }
 0x560   : > { %1445 = vmatmul.mubr.msk.bf16.vlgmr.msra.gmra.mrb[16].mxu0 %vm241_vm0, %v954_v16 }
 0x613   : > { %v1406_v17 = vpop.f32.mrb[8].mxu0 }
 0x614   : > { %v1733_v19 = vadd.f32 %v1690_v41, %v1406_v17  ;;  %v631_v20 = vpop.f32.mrb[9].mxu0 }
 0x615   : > { %v1736_v21 = vadd.f32 %v1692_v42, %v631_v20  ;;  %v1407_v22 = vpop.f32.mrb[10].mxu0 }
 0x616   : > { %v634_v23 = vpop.f32.mrb[11].mxu0 }
 0x617   : > { %v1739_v24 = vadd.f32 %v1696_v44, %v634_v23 }
 0x623   : > { %v1422_v25 = vpop.f32.mrb[12].mxu0 }
 0x624   : > { %v765_v26 = vpop.f32.mrb[13].mxu0  ;;  %v774_v30 = vadd.f32 %v1422_v25, %v1625_v18 }
 0x625   : > { %v766_v27 = vadd.f32 %v765_v26, %v1625_v18  ;;  %v1423_v28 = vpop.f32.mrb[14].mxu0 }
 0x626   : > { %v768_v29 = vpop.f32.mrb[15].mxu0  ;;  %v785_v34 = vsel %vm302_vm2, %v774_v30, -inf }
 0x627   : > { %v769_v31 = vadd.f32 %v768_v29, %v1625_v18  ;;  %v779_v32 = vsel %vm302_vm2, %v766_v27, -inf }
 0x628   : > { %780 = vmax.xlane.f32.xlu0 %v779_v32 }
 0x629   : > { %v782_v33 = vsel %vm302_vm2, %v769_v31, -inf }
 0x62a   : > { %783 = vmax.xlane.f32.xlu1 %v782_v33 }
 0x62c   : > { %786 = vmax.xlane.f32.xlu0 %v785_v34 }
 0x633   : > { %v1446_v35 = vpop.f32.mrb[16].mxu0 }
 0x634   : > { %v1005_v36 = vpop.f32.mrb[17].mxu0  ;;  %v1014_v58 = vadd.f32 %v1446_v35, %v1625_v18 }
 0x635   : > { %v1447_v37 = vpop.f32.mrb[18].mxu0  ;;  %v1006_v56 = vadd.f32 %v1005_v36, %v1625_v18 }
 0x636   : > { %v1008_v38 = vpop.f32.mrb[19].mxu0  ;;  %v1025_v61 = vsel %vm302_vm2, %v1014_v58, -inf }
 0x637   : > { %v1009_v57 = vadd.f32 %v1008_v38, %v1625_v18  ;;  %v1019_v60 = vsel %vm302_vm2, %v1006_v56, -inf }
 0x639   : > { %v1022_v59 = vsel %vm302_vm2, %v1009_v57, -inf }
 0x6b5   : > { %v781_v39 = vpop.xlane.xlu0 %780 }
 0x6b6   : > { %v788_v40 = vsub.f32 %v766_v27, %v781_v39 }
 0x6b7   : > { %v784_v41 = vpop.xlane.xlu1 %783 }
 0x6b8   : > { %v791_v42 = vmul.f32 1.442695, %v788_v40  ;;  %v789_v43 = vsub.f32 %v769_v31, %v784_v41  ;;  %v1495_v31 = vld [vmem:[%s1808_s1 + $0x28] sm:$0xff]  }
 0x6b9   : > { %v787_v44 = vpop.xlane.xlu0 %786 }
 0x6ba   : > { %1522 = vpow2.f32 %v791_v42  ;;  %v793_v45 = vmul.f32 1.442695, %v789_v43  ;;  %v790_v47 = vsub.f32 %v774_v30, %v787_v44  ;;  %v1494_v30 = vld [vmem:[%s1808_s1 + $0x20] sm:$0xff]  }
 0x6bc   : > { %1524 = vpow2.f32 %v793_v45  ;;  %v795_v49 = vmul.f32 1.442695, %v790_v47 }
 0x6be   : > { %1526 = vpow2.f32 %v795_v49 }
 0x6c4   : > { %v1523_v50 = vpop.eup %1522 }
 0x6c5   : > { %v797_v51 = vsel %vm302_vm2, %v1523_v50, 0.0 }
 0x6c6   : > { %v1525_v52 = vpop.eup %1524  ;;  %798 = vadd.xlane.f32.xlu0 %v797_v51 }
 0x6c7   : > { %v800_v54 = vsel %vm302_vm2, %v1525_v52, 0.0 }
 0x6c8   : > { %v1527_v53 = vpop.eup %1526 }
 0x6c9   : > { %v803_v55 = vsel %vm302_vm2, %v1527_v53, 0.0 }
 0x6ca   : > { %801 = vadd.xlane.f32.xlu0 %v800_v54  ;;  %804 = vadd.xlane.f32.xlu1 %v803_v55 }
 0x6db   : > { %816 = vrot.lane.b32.xlu1 %v1641_v48, %s1556_s26 }
 0x6e0   : > { %814 = vrot.lane.b32.xlu0 %v1638_v46, %s1556_s26 }
 0x6ff   : > { %1023 = vmax.xlane.f32.xlu0 %v1022_v59  ;;  %1020 = vmax.xlane.f32.xlu1 %v1019_v60 }
 0x703   : > { %1026 = vmax.xlane.f32.xlu0 %v1025_v61 }
 0x753   : > { %v799_v62 = vpop.xlane.xlu0 %798 }
 0x754   : > { %1528 = vrcp.f32 %v799_v62 }
 0x757   : > { %v805_v63 = vpop.xlane.xlu1 %804  ;;  %v802_v0 = vpop.xlane.xlu0 %801 }
 0x758   : > { %1530 = vrcp.f32 %v805_v63 }
 0x759   : > { %1532 = vrcp.f32 %v802_v0 }
 0x75b   : > { %v815_v1 = vpop.permute.xlu0 %814  ;;  %v817_v2 = vpop.permute.xlu1 %816 }
 0x75c   : > { %1424 = vmatprep.subr.bf16.mxu1 %v815_v1  ;;  %v826_v18 = vsel %vm344_vm3, %v817_v2, 0 }
 0x75d   : > { %1425 = vmatpush3.bf16.msra.mxu1 %v815_v1 }
 0x75e   : > { %1472 = vmatprep.subr.msk.bf16.mxu1 %vm344_vm3, %v817_v2  ;;  %v1529_v5 = vpop.eup %1528 }
 0x75f   : > { %v809_v9 = vmul.f32 %v1529_v5, %v1523_v50 }
 0x761   : > { %1427 = vmatpush3.bf16.msra.mxu1 %v826_v18 }
 0x762   : > { %v1531_v6 = vpop.eup %1530  ;;  %1432 = vmatprep.subr.bf16.mxu1 %v1494_v30 }
 0x763   : > { %v1533_v7 = vpop.eup %1532  ;;  %v811_v8 = vmul.f32 %v1531_v6, %v1527_v53  ;;  %v1497_v53 = vld [vmem:[%s1808_s1 + $0x38] sm:$0xff]   ;;  %v1317_v6 = vld [vmem:[%s1809_s2] ss:$0 sm:$0xff] }
 0x764   : > { %v810_v3 = vmul.f32 %v1533_v7, %v1525_v52  ;;  %v1496_v52 = vld [vmem:[%s1808_s1 + $0x30] sm:$0xff]  }
 0x765   : > { %v813_v4 = vpack.c.bf16 %v811_v8, %v811_v8 }
 0x766   : > { %v812_v10 = vpack.c.bf16 %v810_v3, %v809_v9 }
 0x768   : > { %1428 = vmatprep.mubr.msk.bf16.mxu1 %vm302_vm2, %v812_v10 }
 0x769   : > { %1429 = vmatmul.mubr.msk.bf16.vlgmr.msra.gmra.mrb[12].mxu1 %vm302_vm2, %v813_v4  ;;  %v1192_v4 = vld [vmem:[%s212_s19 + $0x8] sm:$0xff] }
 0x76a   : > { %1433 = vmatpush3.bf16.msra.mxu1 %v1494_v30 }
 0x76b   : > { %1434 = vmatprep.subr.bf16.mxu1 %v1495_v31 }
 0x76e   : > { %1435 = vmatpush3.bf16.msra.mxu1 %v1495_v31 }
 0x78c   : > { %v1021_v14 = vpop.xlane.xlu1 %1020  ;;  %v1024_v11 = vpop.xlane.xlu0 %1023 }
 0x78d   : > { %v1029_v12 = vsub.f32 %v1009_v57, %v1024_v11  ;;  %v1028_v13 = vsub.f32 %v1006_v56, %v1021_v14 }
 0x78f   : > { %v1033_v15 = vmul.f32 1.442695, %v1029_v12  ;;  %v1031_v20 = vmul.f32 1.442695, %v1028_v13 }
 0x790   : > { %v1027_v16 = vpop.xlane.xlu0 %1026 }
 0x791   : > { %v1030_v17 = vsub.f32 %v1014_v58, %v1027_v16  ;;  %1534 = vpow2.f32 %v1033_v15 }
 0x793   : > { %v1035_v22 = vmul.f32 1.442695, %v1030_v17 }
 0x795   : > { %1536 = vpow2.f32 %v1035_v22 }
 0x796   : > { %1538 = vpow2.f32 %v1031_v20 }
 0x79b   : > { %v1535_v23 = vpop.eup %1534 }
 0x79c   : > { %v1040_v25 = vsel %vm302_vm2, %v1535_v23, 0.0 }
 0x79d   : > { %1041 = vadd.xlane.f32.xlu0 %v1040_v25 }
 0x79f   : > { %v1537_v26 = vpop.eup %1536 }
 0x7a0   : > { %v1043_v27 = vsel %vm302_vm2, %v1537_v26, 0.0  ;;  %v1539_v28 = vpop.eup %1538 }
 0x7a1   : > { %1044 = vadd.xlane.f32.xlu1 %v1043_v27  ;;  %v1037_v29 = vsel %vm302_vm2, %v1539_v28, 0.0 }
 0x7a5   : > { %1038 = vadd.xlane.f32.xlu1 %v1037_v29 }
 0x7b3   : > { %1054 = vrot.lane.b32.xlu0 %v1638_v46, %s1557_s5 }
 0x7b6   : > { %1056 = vrot.lane.b32.xlu1 %v1641_v48, %s1557_s5 }
 0x82a   : > { %v1042_v32 = vpop.xlane.xlu0 %1041 }
 0x82b   : > { %1540 = vrcp.f32 %v1042_v32 }
 0x82e   : > { %v1045_v33 = vpop.xlane.xlu1 %1044  ;;  %v1055_v34 = vpop.permute.xlu0 %1054 }
 0x82f   : > { %1448 = vmatprep.subr.bf16.mxu1 %v1055_v34 }
 0x832   : > { %v1039_v46 = vpop.xlane.xlu1 %1038 }
 0x833   : > { %1542 = vrcp.f32 %v1039_v46 }
 0x834   : > { %1544 = vrcp.f32 %v1045_v33 }
 0x835   : > { %v1541_v48 = vpop.eup %1540 }
 0x836   : > { %v1050_v40 = vmul.f32 %v1541_v48, %v1535_v23  ;;  %v1057_v47 = vpop.permute.xlu1 %1056 }
 0x837   : > { %v1066_v50 = vsel %vm344_vm3, %v1057_v47, 0 }
 0x83c   : > { %v1430_v35 = vpop.f32.mrb[12].mxu1 }
 0x83d   : > { %v1543_v36 = vpop.eup %1542  ;;  %v862_v37 = vpop.f32.mrb[13].mxu1  ;;  %v877_v44 = vpack.c.bf16 %v1430_v35, %v1430_v35 }
 0x83e   : > { %v1431_v38 = vpop.f32.mrb[14].mxu1  ;;  %v1049_v39 = vmul.f32 %v1543_v36, %v1539_v28  ;;  %v1545_v45 = vpop.eup %1544 }
 0x83f   : > { %v865_v41 = vpop.f32.mrb[15].mxu1  ;;  %v1051_v49 = vmul.f32 %v1545_v45, %v1537_v26 }
 0x840   : > { %v876_v42 = vpack.c.bf16 %v865_v41, %v862_v37  ;;  %v1052_v43 = vpack.c.bf16 %v1050_v40, %v1049_v39 }
 0x841   : > { %v1053_v51 = vpack.c.bf16 %v1051_v49, %v1051_v49 }
 0x842   : > { %1436 = vmatprep.mubr.msk.bf16.mxu1 %vm241_vm0, %v876_v42 }
 0x843   : > { %1437 = vmatmul.mubr.msk.bf16.vlgmr.msra.gmra.mrb[16].mxu1 %vm241_vm0, %v877_v44 }
 0x844   : > { %1449 = vmatpush3.bf16.msra.mxu1 %v1055_v34  ;;  %1452 = vmatprep.mubr.msk.bf16.mxu1 %vm302_vm2, %v1052_v43 }
 0x845   : > { %1475 = vmatprep.subr.msk.bf16.mxu1 %vm344_vm3, %v1057_v47 }
 0x848   : > { %1451 = vmatpush3.bf16.msra.mxu1 %v1066_v50 }
 0x849   : > { %1456 = vmatprep.subr.bf16.mxu1 %v1496_v52 }
 0x84b   : > { %1453 = vmatmul.mubr.msk.bf16.vlgmr.msra.gmra.mrb[20].mxu1 %vm302_vm2, %v1053_v51 }
 0x84c   : > { %1457 = vmatpush3.bf16.msra.mxu1 %v1496_v52 }
 0x84d   : > { %1458 = vmatprep.subr.bf16.mxu1 %v1497_v53 }
 0x850   : > { %1459 = vmatpush3.bf16.msra.mxu1 %v1497_v53 }
 0x916   : > { %v1438_v54 = vpop.f32.mrb[16].mxu1 }
 0x917   : > { %v950_v55 = vadd.f32 %v1438_v54, %v1733_v19  ;;  %v934_v56 = vpop.f32.mrb[17].mxu1 }
 0x918   : > { %v948_v57 = vadd.f32 %v934_v56, %v1736_v21  ;;  %v1439_v58 = vpop.f32.mrb[18].mxu1  ;;  %v1193_v21 = vld [vmem:[%s212_s19 + $0x10] sm:$0xff] }
 0x919   : > { %v937_v59 = vpop.f32.mrb[19].mxu1 }
 0x91a   : > { %v949_v60 = vadd.f32 %v937_v59, %v1739_v24  ;;  %v1191_v24 = vld [vmem:[%s212_s19] sm:$0xff] }
 0x91e   : > { %v1454_v61 = vpop.f32.mrb[20].mxu1 }
 0x91f   : > { %v1102_v62 = vpop.f32.mrb[21].mxu1  ;;  %v1117_v2 = vpack.c.bf16 %v1454_v61, %v1454_v61 }
 0x920   : > { %v1455_v63 = vpop.f32.mrb[22].mxu1 }
 0x921   : > { %v1105_v0 = vpop.f32.mrb[23].mxu1 }
 0x922   : > { %v1116_v1 = vpack.c.bf16 %v1105_v0, %v1102_v62 }
 0x924   : > { %1460 = vmatprep.mubr.msk.bf16.mxu1 %vm241_vm0, %v1116_v1 }
 0x925   : > { %1461 = vmatmul.mubr.msk.bf16.vlgmr.msra.gmra.mrb[24].mxu1 %vm241_vm0, %v1117_v2 }
 0x9f8   : > { %v1462_v19 = vpop.f32.mrb[24].mxu1 }
 0x9f9   : > { %v1190_v18 = vadd.f32 %v1462_v19, %v950_v55  ;;  %v1174_v5 = vpop.f32.mrb[25].mxu1 }
 0x9fa   : > { %v1188_v7 = vadd.f32 %v1174_v5, %v948_v57  ;;  %v1463_v8 = vpop.f32.mrb[26].mxu1 }
 0x9fb   : > { %v1196_v9 = vadd.f32 %v1193_v21, %v1190_v18  ;;  %v1177_v3 = vpop.f32.mrb[27].mxu1 }
 0x9fc   : > { %v1194_v10 = vadd.f32 %v1191_v24, %v1188_v7  ;;  %v1189_v14 = vadd.f32 %v1177_v3, %v949_v60 }
 0x9fd   : > { %v1206_v11 = vadd.f32 %v1317_v6, %v1196_v9 }
 0x9fe   : > { %v1204_v12 = vadd.f32 %v1317_v6, %v1194_v10  ;;  %v1195_v13 = vadd.f32 %v1192_v4, %v1189_v14 }
 0x9ff   : > { %1209 = vst [vmem:[%s217_s23 + $0x10] sm:$0xff] %v1206_v11 }
 0xa00   : > { %1207 = vst [vmem:[%s217_s23] sm:$0xff] %v1204_v12  ;;  %v1205_v15 = vadd.f32 %v1317_v6, %v1195_v13 }
 0xa02   : > { %1208 = vst [vmem:[%s217_s23 + $0x8] sm:$0xff] %v1205_v15 }
 0xa03 PF: > { %s14_s15 = sadd.s32 1, %s1552_s15  }
 0xa04   : > { %p11_p4 = scmp.ge.s32.totalorder %s14_s15, 4  }
 0xa06   :  { %13 = sbr.rel (!%p11_p4) target bundleno = 1 (0x1), region = 69 }

// kernel: sat_img_encoder_forward.15
= control target key start
LH: loop header
LB: loop body
LE: loop exit
PB: predicated region body
PF: predicated region fallthrough
CT: control target
= control target key end

     0   :  { %s328_s12 = smov 0   ;;  %s358_s0 = inlined_call_operand.vmem [shape: f32[48,128], index: 0, kind: input, shape index: {}]   ;;  %s359_s1 = inlined_call_operand.vmem [shape: f32[1,128], index: 1, kind: input, shape index: {}]   ;;  %s360_s2 = inlined_call_operand.vmem [shape: f32[1,128], index: 2, kind: input, shape index: {}]   ;;  %s361_s3 = inlined_call_operand.vmem [shape: f32[48,128], index: 3, kind: output, shape index: {}]  }
   0x1 LB: > { %s275_s13 = sadd.s32 4294967295, %s306_s12   ;;  %p279_p0 = scmp.ge.s32.totalorder %s306_s12, 1  ;;  %s306_s12 = sphi %s328_s12, %s13_s12  }
   0x2   : > { %p138_p1 = scmp.lt.s32.totalorder %s306_s12, 4 }
   0x4   : > { %p139_p2 = pnand %p279_p0, %p138_p1 }
   0x5   : > { %s280_s14 = sshll.u32 (!%p139_p2), %s275_s13, 1  ;;  %v284_v17 = vld [vmem:[%s359_s1] ss:$0 sm:$0xff] (!%p139_p2) }
   0x6   : > { %142 = sbr.rel (%p139_p2) target bundleno = 333 (0x14d), region = 32  ;;  %p163_p3 = scmp.lt.s32.totalorder (!%p139_p2), %s280_s14, 5  ;;  %v285_v19 = vld [vmem:[%s360_s2] ss:$0 sm:$0xff] (!%p139_p2) }
   0xd   : > { %s363_s14 = smov (!%p163_p3, %s280_s14), 5 }
   0xe   : > { %s281_s15 = sshll.u32 %s363_s14, 3 }
   0xf   : > { %s166_s18 = scalar_lea.vmem %s358_s0, %s281_s15  ;;  %s172_s25 = scalar_lea.vmem %s361_s3, %s281_s15 }
  0x10   : > { %v174_v0 = vld [vmem:[%s166_s18] sm:$0xff]  ;;  %v175_v1 = vld [vmem:[%s166_s18 + $0x8] sm:$0xff] }
  0x11   : > { %178 = vadd.xlane.f32.xlu0 %v174_v0 }
  0x15   : > { %180 = vadd.xlane.f32.xlu0 %v175_v1 }
  0x9e   : > { %v179_v2 = vpop.xlane.xlu0 %178 }
  0x9f   : > { %v183_v3 = vmul.f32 0.0078125, %v179_v2 }
  0xa1   : > { %v185_v4 = vsub.f32 %v174_v0, %v183_v3 }
  0xa2   : > { %v181_v5 = vpop.xlane.xlu0 %180 }
  0xa3   : > { %v184_v6 = vmul.f32 0.0078125, %v181_v5  ;;  %v187_v7 = vmul.f32 %v185_v4, %v185_v4 }
  0xa5   : > { %v186_v8 = vsub.f32 %v175_v1, %v184_v6  ;;  %189 = vadd.xlane.f32.xlu1 %v187_v7 }
  0xa7   : > { %v188_v9 = vmul.f32 %v186_v8, %v186_v8 }
  0xa9   : > { %191 = vadd.xlane.f32.xlu1 %v188_v9 }
 0x132   : > { %v190_v10 = vpop.xlane.xlu1 %189 }
 0x133   : > { %v193_v11 = vmul.f32 0.0078125, %v190_v10 }
 0x135   : > { %v195_v12 = vadd.f32 1e-06, %v193_v11 }
 0x136   : > { %v192_v13 = vpop.xlane.xlu1 %191 }
 0x137   : > { %296 = vrsqrt.f32 %v195_v12  ;;  %v194_v14 = vmul.f32 0.0078125, %v192_v13 }
 0x139   : > { %v196_v15 = vadd.f32 1e-06, %v194_v14 }
 0x13b   : > { %298 = vrsqrt.f32 %v196_v15 }
 0x141   : > { %v297_v16 = vpop.eup %296 }
 0x142   : > { %v199_v18 = vmul.f32 %v297_v16, %v185_v4 }
 0x144   : > { %v207_v20 = vmul.f32 %v284_v17, %v199_v18 }
 0x145   : > { %v299_v21 = vpop.eup %298 }
 0x146   : > { %v215_v22 = vadd.f32 %v285_v19, %v207_v20  ;;  %v200_v23 = vmul.f32 %v299_v21, %v186_v8 }
 0x148   : > { %217 = vst [vmem:[%s172_s25] sm:$0xff] %v215_v22  ;;  %v208_v24 = vmul.f32 %v284_v17, %v200_v23 }
 0x14a   : > { %v216_v25 = vadd.f32 %v285_v19, %v208_v24 }
 0x14c   : > { %218 = vst [vmem:[%s172_s25 + $0x8] sm:$0xff] %v216_v25 }
 0x14d PF: > { %s13_s12 = sadd.s32 1, %s306_s12  }
 0x14e   : > { %p10_p4 = scmp.ge.s32.totalorder %s13_s12, 5  }
 0x150   :  { %12 = sbr.rel (!%p10_p4) target bundleno = 1 (0x1), region = 62 }

// kernel: sat_img_encoder_forward.11
= control target key start
LH: loop header
LB: loop body
LE: loop exit
PB: predicated region body
PF: predicated region fallthrough
CT: control target
= control target key end

     0   :  { %s1388_s24 = smov 0   ;;  %s1692_s0 = inlined_call_operand.vmem [shape: f32[48,128], index: 0, kind: input, shape index: {}]   ;;  %s1693_s1 = inlined_call_operand.vmem [shape: f32[1,128], index: 1, kind: input, shape index: {}]   ;;  %s1694_s2 = inlined_call_operand.vmem [shape: f32[1,128], index: 2, kind: input, shape index: {}]   ;;  %s1695_s3 = inlined_call_operand.vmem [shape: bf16[128,512], index: 3, kind: input, shape index: {}]   ;;  %s1696_s4 = inlined_call_operand.vmem [shape: f32[1,512], index: 4, kind: input, shape index: {}]   ;;  %s1697_s5 = inlined_call_operand.vmem [shape: bf16[512,128], index: 5, kind: input, shape index: {}]   ;;  %s1698_s6 = inlined_call_operand.vmem [shape: f32[1,128], index: 6, kind: input, shape index: {}]   ;;  %s1699_s7 = inlined_call_operand.vmem [shape: f32[48,128], index: 7, kind: output, shape index: {}]  }
   0x1 LB: > { %s1108_s25 = sadd.s32 4294967295, %s1345_s24   ;;  %p1112_p0 = scmp.ge.s32.totalorder %s1345_s24, 1  ;;  %s1345_s24 = sphi %s1388_s24, %s17_s24  }
   0x2   : > { %p238_p1 = scmp.lt.s32.totalorder %s1345_s24, 4 }
   0x4   : > { %p239_p2 = pnand %p1112_p0, %p238_p1 }
   0x5   : > { %s1113_s26 = sshll.u32 (!%p239_p2), %s1108_s25, 1  ;;  %v1239_v2 = vld [vmem:[%s1695_s3 + $0x4] ss:$16 sps:$4 sm:$0xff] (!%p239_p2)   ;;  %v1241_v3 = vld [vmem:[%s1695_s3 + $0xc] ss:$16 sps:$4 sm:$0xff] (!%p239_p2)   ;;  %v1347_v36 = vmov (!%p239_p2), 0  }
   0x6   : > { %242 = sbr.rel (%p239_p2) target bundleno = 808 (0x328), region = 48  ;;  %p271_p3 = scmp.lt.s32.totalorder (!%p239_p2), %s1113_s26, 5  ;;  %v1243_v4 = vld [vmem:[%s1695_s3] ss:$16 sps:$4 sm:$0xff] (!%p239_p2)   ;;  %v1244_v5 = vld [vmem:[%s1695_s3 + $0x8] ss:$16 sps:$4 sm:$0xff] (!%p239_p2)   ;;  %541 = vmatprep.subr.bf16.mxu0 (!%p239_p2), %v1239_v2  ;;  %584 = vmatprep.subr.bf16.mxu1 (!%p239_p2), %v1241_v3 }
   0x7   : > { %v1245_v6 = vld [vmem:[%s1695_s3 + $0x24] ss:$16 sps:$4 sm:$0xff] (!%p239_p2)   ;;  %v1247_v7 = vld [vmem:[%s1695_s3 + $0x2c] ss:$16 sps:$4 sm:$0xff] (!%p239_p2)   ;;  %542 = vmatpush1.bf16.msra.mxu0 (!%p239_p2), %v1243_v4  ;;  %585 = vmatpush1.bf16.msra.mxu1 (!%p239_p2), %v1244_v5  ;;  %v1249_v16 = vld [vmem:[%s1695_s3 + $0x20] ss:$16 sps:$4 sm:$0xff] (!%p239_p2)  }
   0x8   : > { %543 = vmatprep.subr.bf16.mxu0 (!%p239_p2), %v1245_v6  ;;  %586 = vmatprep.subr.bf16.mxu1 (!%p239_p2), %v1247_v7  ;;  %v1250_v17 = vld [vmem:[%s1695_s3 + $0x28] ss:$16 sps:$4 sm:$0xff] (!%p239_p2)   ;;  %v1251_v18 = vld [vmem:[%s1695_s3 + $0x44] ss:$16 sps:$4 sm:$0xff] (!%p239_p2)   ;;  %v1253_v19 = vld [vmem:[%s1695_s3 + $0x4c] ss:$16 sps:$4 sm:$0xff] (!%p239_p2)  }
   0x9   : > { %v1255_v20 = vld [vmem:[%s1695_s3 + $0x40] ss:$16 sps:$4 sm:$0xff] (!%p239_p2)   ;;  %v1256_v21 = vld [vmem:[%s1695_s3 + $0x48] ss:$16 sps:$4 sm:$0xff] (!%p239_p2)   ;;  %v1257_v22 = vld [vmem:[%s1695_s3 + $0x64] ss:$16 sps:$4 sm:$0xff] (!%p239_p2)   ;;  %573 = vmatprep.mubr.bf16.mxu0 (!%p239_p2), %v1347_v36  ;;  %616 = vmatprep.mubr.bf16.mxu1 (!%p239_p2), %v1347_v36 }
   0xa   : > { %v1259_v23 = vld [vmem:[%s1695_s3 + $0x6c] ss:$16 sps:$4 sm:$0xff] (!%p239_p2)   ;;  %v1261_v24 = vld [vmem:[%s1695_s3 + $0x60] ss:$16 sps:$4 sm:$0xff] (!%p239_p2)   ;;  %v1262_v25 = vld [vmem:[%s1695_s3 + $0x68] ss:$16 sps:$4 sm:$0xff] (!%p239_p2)  }
   0xb   : > { %544 = vmatpush1.bf16.msra.mxu0 (!%p239_p2), %v1249_v16  ;;  %587 = vmatpush1.bf16.msra.mxu1 (!%p239_p2), %v1250_v17  ;;  %v1263_v26 = vld [vmem:[%s1695_s3 + $0x84] ss:$16 sps:$4 sm:$0xff] (!%p239_p2)   ;;  %v1265_v27 = vld [vmem:[%s1695_s3 + $0x8c] ss:$16 sps:$4 sm:$0xff] (!%p239_p2)   ;;  %v1267_v28 = vld [vmem:[%s1695_s3 + $0x80] ss:$16 sps:$4 sm:$0xff] (!%p239_p2)  }
   0xc   : > { %545 = vmatprep.subr.bf16.mxu0 (!%p239_p2), %v1251_v18  ;;  %588 = vmatprep.subr.bf16.mxu1 (!%p239_p2), %v1253_v19  ;;  %v1268_v29 = vld [vmem:[%s1695_s3 + $0x88] ss:$16 sps:$4 sm:$0xff] (!%p239_p2)   ;;  %v1269_v30 = vld [vmem:[%s1695_s3 + $0xa4] ss:$16 sps:$4 sm:$0xff] (!%p239_p2)   ;;  %v1271_v31 = vld [vmem:[%s1695_s3 + $0xac] ss:$16 sps:$4 sm:$0xff] (!%p239_p2)  }
   0xd   : > { %s1701_s26 = smov (!%p271_p3, %s1113_s26), 5  ;;  %v1273_v32 = vld [vmem:[%s1695_s3 + $0xa0] ss:$16 sps:$4 sm:$0xff]   ;;  %v1274_v33 = vld [vmem:[%s1695_s3 + $0xa8] ss:$16 sps:$4 sm:$0xff]  }
   0xe   : > { %s1114_s27 = sshll.u32 %s1701_s26, 3  ;;  %v1275_v34 = vld [vmem:[%s1695_s3 + $0xc4] ss:$16 sps:$4 sm:$0xff]   ;;  %v1277_v35 = vld [vmem:[%s1695_s3 + $0xcc] ss:$16 sps:$4 sm:$0xff]  }
   0xf   : > { %s274_s30 = scalar_lea.vmem %s1692_s0, %s1114_s27  ;;  %546 = vmatpush1.bf16.msra.mxu0 %v1255_v20  ;;  %589 = vmatpush1.bf16.msra.mxu1 %v1256_v21  ;;  %v1279_v37 = vld [vmem:[%s1695_s3 + $0xc0] ss:$16 sps:$4 sm:$0xff]   ;;  %v1280_v38 = vld [vmem:[%s1695_s3 + $0xc8] ss:$16 sps:$4 sm:$0xff]   ;;  %v1281_v39 = vld [vmem:[%s1695_s3 + $0xe4] ss:$16 sps:$4 sm:$0xff]   ;;  %s280_s29 = scalar_lea.vmem %s1699_s7, %s1114_s27 }
  0x10   : > { %v1404_v0 = vld [vmem:[%s274_s30] sm:$0xff]  ;;  %v1406_v1 = vld [vmem:[%s274_s30 + $0x8] sm:$0xff]  ;;  %547 = vmatprep.subr.bf16.mxu0 %v1257_v22  ;;  %590 = vmatprep.subr.bf16.mxu1 %v1259_v23  ;;  %v1295_v6 = vld [vmem:[%s1697_s5 + $0x50] sm:$0xff]  }
  0x11   : > { %287 = vadd.xlane.f32.xlu0 %v1404_v0  ;;  %v1283_v40 = vld [vmem:[%s1695_s3 + $0xec] ss:$16 sps:$4 sm:$0xff]   ;;  %v1285_v41 = vld [vmem:[%s1695_s3 + $0xe0] ss:$16 sps:$4 sm:$0xff]   ;;  %v1286_v42 = vld [vmem:[%s1695_s3 + $0xe8] ss:$16 sps:$4 sm:$0xff]  }
  0x12   : > { %v1117_v51 = vld [vmem:[%s1693_s1] ss:$0 sm:$0xff]  ;;  %v1291_v2 = vld [vmem:[%s1697_s5 + $0x48] sm:$0xff]   ;;  %v1296_v7 = vld [vmem:[%s1697_s5 + $0xd0] sm:$0xff]  }
  0x13   : > { %548 = vmatpush1.bf16.msra.mxu0 %v1261_v24  ;;  %591 = vmatpush1.bf16.msra.mxu1 %v1262_v25  ;;  %v1118_v55 = vld [vmem:[%s1694_s2] ss:$0 sm:$0xff]  ;;  %v1292_v3 = vld [vmem:[%s1697_s5 + $0xc8] sm:$0xff]   ;;  %v1311_v22 = vld [vmem:[%s1697_s5 + $0x70] sm:$0xff]  }
  0x14   : > { %549 = vmatprep.subr.bf16.mxu0 %v1263_v26  ;;  %592 = vmatprep.subr.bf16.mxu1 %v1265_v27  ;;  %v1287_v60 = vld [vmem:[%s1697_s5 + $0x40] sm:$0xff]   ;;  %v1293_v4 = vld [vmem:[%s1697_s5 + $0x8] sm:$0xff]   ;;  %v1312_v23 = vld [vmem:[%s1697_s5 + $0xf0] sm:$0xff]  }
  0x15   : > { %289 = vadd.xlane.f32.xlu0 %v1406_v1  ;;  %v1288_v61 = vld [vmem:[%s1697_s5 + $0xc0] sm:$0xff]   ;;  %v1294_v5 = vld [vmem:[%s1697_s5 + $0x88] sm:$0xff]   ;;  %v1313_v24 = vld [vmem:[%s1697_s5 + $0x30] sm:$0xff]  }
  0x16   : > { %v1289_v62 = vld [vmem:[%s1697_s5] sm:$0xff]   ;;  %v1307_v18 = vld [vmem:[%s1697_s5 + $0x68] sm:$0xff]   ;;  %v1314_v25 = vld [vmem:[%s1697_s5 + $0xb0] sm:$0xff]  }
  0x17   : > { %550 = vmatpush1.bf16.msra.mxu0 %v1267_v28  ;;  %593 = vmatpush1.bf16.msra.mxu1 %v1268_v29  ;;  %v1290_v63 = vld [vmem:[%s1697_s5 + $0x80] sm:$0xff]   ;;  %v1308_v19 = vld [vmem:[%s1697_s5 + $0xe8] sm:$0xff]   ;;  %v1315_v26 = vld [vmem:[%s1697_s5 + $0x78] sm:$0xff]  }
  0x18   : > { %551 = vmatprep.subr.bf16.mxu0 %v1269_v30  ;;  %594 = vmatprep.subr.bf16.mxu1 %v1271_v31  ;;  %v1305_v16 = vld [vmem:[%s1697_s5 + $0x20] sm:$0xff]   ;;  %v1309_v20 = vld [vmem:[%s1697_s5 + $0x28] sm:$0xff]   ;;  %v1316_v27 = vld [vmem:[%s1697_s5 + $0xf8] sm:$0xff]   ;;  %v361_v30 = vlaneseq }
  0x19   : > { %v1306_v17 = vld [vmem:[%s1697_s5 + $0xa0] sm:$0xff]   ;;  %v1310_v21 = vld [vmem:[%s1697_s5 + $0xa8] sm:$0xff]   ;;  %v1317_v28 = vld [vmem:[%s1697_s5 + $0x38] sm:$0xff]  }
  0x1a   : > { %v1318_v29 = vld [vmem:[%s1697_s5 + $0xb8] sm:$0xff]   ;;  %v362_v31 = vshrl.u32 %v361_v30, 7 }
  0x1b   : > { %552 = vmatpush1.bf16.msra.mxu0 %v1273_v32  ;;  %595 = vmatpush1.bf16.msra.mxu1 %v1274_v33 }
  0x1c   : > { %553 = vmatprep.subr.bf16.mxu0 %v1275_v34  ;;  %596 = vmatprep.subr.bf16.mxu1 %v1277_v35  ;;  %v363_v32 = vsub.s32 0, %v362_v31  ;;  %v371_v33 = vsub.s32 2, %v362_v31  ;;  %v359_v34 = vld [vmem:[%s1696_s4] sm:$0xf]  ;;  %v367_v35 = vsub.s32 1, %v362_v31  ;;  %v375_v36 = vsub.s32 3, %v362_v31 }
  0x1f   : > { %554 = vmatpush1.bf16.msra.mxu0 %v1279_v37  ;;  %597 = vmatpush1.bf16.msra.mxu1 %v1280_v38  ;;  %v364_v37 = vrot.slane %v359_v34, %v363_v32  ;;  %v372_v38 = vrot.slane %v359_v34, %v371_v33 }
  0x20   : > { %555 = vmatprep.subr.bf16.mxu0 %v1281_v39  ;;  %598 = vmatprep.subr.bf16.mxu1 %v1283_v40  ;;  %v368_v39 = vrot.slane %v359_v34, %v367_v35  ;;  %v376_v40 = vrot.slane %v359_v34, %v375_v36 }
  0x23   : > { %556 = vmatpush1.bf16.msra.mxu0 %v1285_v41  ;;  %599 = vmatpush1.bf16.msra.mxu1 %v1286_v42 }
  0x24   : > { %1186 = vmatprep.subr.bf16.mxu0 %v1287_v60  ;;  %1208 = vmatprep.subr.bf16.mxu1 %v1288_v61 }
  0x9e   : > { %v288_v8 = vpop.xlane.xlu0 %287 }
  0x9f   : > { %v292_v9 = vmul.f32 0.0078125, %v288_v8  ;;  %v1297_v8 = vld [vmem:[%s1697_s5 + $0x10] sm:$0xff]  }
  0xa1   : > { %v1429_v10 = vsub.f32 %v1404_v0, %v292_v9  ;;  %v1298_v9 = vld [vmem:[%s1697_s5 + $0x90] sm:$0xff]  }
  0xa2   : > { %v290_v11 = vpop.xlane.xlu0 %289 }
  0xa3   : > { %v293_v12 = vmul.f32 0.0078125, %v290_v11  ;;  %v296_v13 = vmul.f32 %v1429_v10, %v1429_v10  ;;  %v1300_v11 = vld [vmem:[%s1697_s5 + $0xd8] sm:$0xff]  }
  0xa5   : > { %v1434_v14 = vsub.f32 %v1406_v1, %v293_v12  ;;  %298 = vadd.xlane.f32.xlu1 %v296_v13  ;;  %v1301_v12 = vld [vmem:[%s1697_s5 + $0x18] sm:$0xff]  }
  0xa6   : > { %v1302_v13 = vld [vmem:[%s1697_s5 + $0x98] sm:$0xff]  }
  0xa7   : > { %v297_v15 = vmul.f32 %v1434_v14, %v1434_v14 }
  0xa9   : > { %300 = vadd.xlane.f32.xlu1 %v297_v15  ;;  %v1304_v15 = vld [vmem:[%s1697_s5 + $0xe0] sm:$0xff]  }
 0x132   : > { %v299_v43 = vpop.xlane.xlu1 %298 }
 0x133   : > { %v302_v44 = vmul.f32 0.0078125, %v299_v43 }
 0x135   : > { %v304_v45 = vadd.f32 1e-06, %v302_v44 }
 0x136   : > { %v301_v46 = vpop.xlane.xlu1 %300 }
 0x137   : > { %1319 = vrsqrt.f32 %v304_v45  ;;  %v303_v47 = vmul.f32 0.0078125, %v301_v46 }
 0x139   : > { %v305_v48 = vadd.f32 1e-06, %v303_v47 }
 0x13b   : > { %1321 = vrsqrt.f32 %v305_v48 }
 0x141   : > { %v1320_v49 = vpop.eup %1319 }
 0x142   : > { %v308_v50 = vmul.f32 %v1320_v49, %v1429_v10  ;;  %v1299_v10 = vld [vmem:[%s1697_s5 + $0x58] sm:$0xff]  }
 0x144   : > { %v316_v54 = vmul.f32 %v1117_v51, %v308_v50 }
 0x145   : > { %v1322_v52 = vpop.eup %1321 }
 0x146   : > { %v309_v53 = vmul.f32 %v1322_v52, %v1434_v14  ;;  %v324_v57 = vadd.f32 %v1118_v55, %v316_v54  ;;  %v1303_v14 = vld [vmem:[%s1697_s5 + $0x60] sm:$0xff]  }
 0x148   : > { %v317_v56 = vmul.f32 %v1117_v51, %v309_v53 }
 0x14a   : > { %v325_v58 = vadd.f32 %v1118_v55, %v317_v56 }
 0x14c   : > { %v326_v59 = vpack.c.bf16 %v325_v58, %v324_v57 }
 0x14e   : > { %574 = vmatmul.mubr.bf16.vlgmr.msra.gmra.mrb[0].mxu0 %v326_v59  ;;  %617 = vmatmul.mubr.bf16.vlgmr.msra.gmra.mrb[0].mxu1 %v326_v59 }
 0x14f   : > { %1187 = vmatpush3.bf16.msra.mxu0 %v1289_v62  ;;  %1209 = vmatpush3.bf16.msra.mxu1 %v1290_v63 }
 0x150   : > { %1188 = vmatprep.subr.bf16.mxu0 %v1291_v2  ;;  %1210 = vmatprep.subr.bf16.mxu1 %v1292_v3 }
 0x153   : > { %1189 = vmatpush3.bf16.msra.mxu0 %v1293_v4  ;;  %1211 = vmatpush3.bf16.msra.mxu1 %v1294_v5 }
 0x154   : > { %1190 = vmatprep.subr.bf16.mxu0 %v1295_v6  ;;  %1212 = vmatprep.subr.bf16.mxu1 %v1296_v7 }
 0x157   : > { %1191 = vmatpush3.bf16.msra.mxu0 %v1297_v8  ;;  %1213 = vmatpush3.bf16.msra.mxu1 %v1298_v9 }
 0x158   : > { %1192 = vmatprep.subr.bf16.mxu0 %v1299_v10  ;;  %1214 = vmatprep.subr.bf16.mxu1 %v1300_v11 }
 0x15b   : > { %1193 = vmatpush3.bf16.msra.mxu0 %v1301_v12  ;;  %1215 = vmatpush3.bf16.msra.mxu1 %v1302_v13 }
 0x15c   : > { %1194 = vmatprep.subr.bf16.mxu0 %v1303_v14  ;;  %1216 = vmatprep.subr.bf16.mxu1 %v1304_v15 }
 0x15f   : > { %1195 = vmatpush3.bf16.msra.mxu0 %v1305_v16  ;;  %1217 = vmatpush3.bf16.msra.mxu1 %v1306_v17 }
 0x160   : > { %1196 = vmatprep.subr.bf16.mxu0 %v1307_v18  ;;  %1218 = vmatprep.subr.bf16.mxu1 %v1308_v19 }
 0x163   : > { %1197 = vmatpush3.bf16.msra.mxu0 %v1309_v20  ;;  %1219 = vmatpush3.bf16.msra.mxu1 %v1310_v21 }
 0x164   : > { %1198 = vmatprep.subr.bf16.mxu0 %v1311_v22  ;;  %1220 = vmatprep.subr.bf16.mxu1 %v1312_v23 }
 0x167   : > { %1199 = vmatpush3.bf16.msra.mxu0 %v1313_v24  ;;  %1221 = vmatpush3.bf16.msra.mxu1 %v1314_v25 }
 0x168   : > { %1200 = vmatprep.subr.bf16.mxu0 %v1315_v26  ;;  %1222 = vmatprep.subr.bf16.mxu1 %v1316_v27 }
 0x16b   : > { %1201 = vmatpush3.bf16.msra.mxu0 %v1317_v28  ;;  %1223 = vmatpush3.bf16.msra.mxu1 %v1318_v29 }
 0x221   : > { %v575_v41 = vpop.f32.mrb[0].mxu0  ;;  %v618_v42 = vpop.f32.mrb[0].mxu1 }
 0x222   : > { %v1623_v43 = vadd.f32 %v575_v41, %v364_v37  ;;  %v1625_v44 = vadd.f32 %v618_v42, %v372_v38  ;;  %v577_v45 = vpop.f32.mrb[1].mxu0  ;;  %v620_v46 = vpop.f32.mrb[1].mxu1 }
 0x223   : > { %v1627_v47 = vadd.f32 %v577_v45, %v368_v39  ;;  %v1629_v48 = vadd.f32 %v620_v46, %v376_v40  ;;  %v579_v49 = vpop.f32.mrb[2].mxu0  ;;  %v622_v50 = vpop.f32.mrb[2].mxu1 }
 0x224   : > { %v627_v51 = vmul.f32 %v1623_v43, %v1623_v43  ;;  %v629_v52 = vmul.f32 %v1625_v44, %v1625_v44  ;;  %v1635_v53 = vadd.f32 %v579_v49, %v364_v37  ;;  %v1637_v54 = vadd.f32 %v622_v50, %v372_v38  ;;  %v581_v55 = vpop.f32.mrb[3].mxu0  ;;  %v624_v56 = vpop.f32.mrb[3].mxu1 }
 0x225   : > { %v628_v57 = vmul.f32 %v1627_v47, %v1627_v47  ;;  %v630_v58 = vmul.f32 %v1629_v48, %v1629_v48  ;;  %v1643_v59 = vadd.f32 %v581_v55, %v368_v39  ;;  %v1645_v60 = vadd.f32 %v624_v56, %v376_v40 }
 0x226   : > { %v635_v61 = vmul.f32 %v627_v51, %v1623_v43  ;;  %v637_v62 = vmul.f32 %v629_v52, %v1625_v44  ;;  %v631_v63 = vmul.f32 %v1635_v53, %v1635_v53  ;;  %v633_v2 = vmul.f32 %v1637_v54, %v1637_v54 }
 0x227   : > { %v636_v3 = vmul.f32 %v628_v57, %v1627_v47  ;;  %v638_v4 = vmul.f32 %v630_v58, %v1629_v48  ;;  %v632_v5 = vmul.f32 %v1643_v59, %v1643_v59  ;;  %v634_v6 = vmul.f32 %v1645_v60, %v1645_v60 }
 0x228   : > { %v643_v7 = vmul.f32 0.044715, %v635_v61  ;;  %v645_v8 = vmul.f32 0.044715, %v637_v62  ;;  %v639_v9 = vmul.f32 %v631_v63, %v1635_v53  ;;  %v641_v10 = vmul.f32 %v633_v2, %v1637_v54 }
 0x229   : > { %v644_v11 = vmul.f32 0.044715, %v636_v3  ;;  %v646_v12 = vmul.f32 0.044715, %v638_v4  ;;  %v640_v13 = vmul.f32 %v632_v5, %v1643_v59  ;;  %v642_v14 = vmul.f32 %v634_v6, %v1645_v60 }
 0x22a   : > { %v651_v15 = vadd.f32 %v643_v7, %v1623_v43  ;;  %v653_v16 = vadd.f32 %v645_v8, %v1625_v44  ;;  %v647_v17 = vmul.f32 0.044715, %v639_v9  ;;  %v649_v18 = vmul.f32 0.044715, %v641_v10 }
 0x22b   : > { %v652_v19 = vadd.f32 %v644_v11, %v1627_v47  ;;  %v654_v20 = vadd.f32 %v646_v12, %v1629_v48  ;;  %v648_v21 = vmul.f32 0.044715, %v640_v13  ;;  %v650_v22 = vmul.f32 0.044715, %v642_v14 }
 0x22c   : > { %v659_v23 = vmul.f32 0.7978846, %v651_v15  ;;  %v661_v24 = vmul.f32 0.7978846, %v653_v16  ;;  %v655_v25 = vadd.f32 %v647_v17, %v1635_v53  ;;  %v657_v26 = vadd.f32 %v649_v18, %v1637_v54 }
 0x22d   : > { %v660_v27 = vmul.f32 0.7978846, %v652_v19  ;;  %v662_v28 = vmul.f32 0.7978846, %v654_v20  ;;  %v656_v29 = vadd.f32 %v648_v21, %v1643_v59  ;;  %v658_v30 = vadd.f32 %v650_v22, %v1645_v60 }
 0x22e   : > { %1323 = vtanh.f32 %v659_v23  ;;  %v663_v31 = vmul.f32 0.7978846, %v655_v25  ;;  %v665_v32 = vmul.f32 0.7978846, %v657_v26 }
 0x22f   : > { %1325 = vtanh.f32 %v661_v24  ;;  %v664_v33 = vmul.f32 0.7978846, %v656_v29  ;;  %v666_v34 = vmul.f32 0.7978846, %v658_v30 }
 0x230   : > { %1327 = vtanh.f32 %v660_v27 }
 0x231   : > { %1329 = vtanh.f32 %v662_v28 }
 0x232   : > { %1331 = vtanh.f32 %v663_v31 }
 0x233   : > { %1333 = vtanh.f32 %v665_v32 }
 0x234   : > { %1335 = vtanh.f32 %v664_v33 }
 0x235   : > { %1337 = vtanh.f32 %v666_v34 }
 0x238   : > { %v1324_v35 = vpop.eup %1323 }
 0x239   : > { %v1326_v36 = vpop.eup %1325  ;;  %v675_v37 = vadd.f32 1.0, %v1324_v35 }
 0x23a   : > { %v1328_v38 = vpop.eup %1327  ;;  %v677_v39 = vadd.f32 1.0, %v1326_v36 }
 0x23b   : > { %v1330_v40 = vpop.eup %1329  ;;  %v676_v41 = vadd.f32 1.0, %v1328_v38  ;;  %v683_v49 = vmul.f32 0.5, %v675_v37 }
 0x23c   : > { %v1332_v42 = vpop.eup %1331  ;;  %v678_v45 = vadd.f32 1.0, %v1330_v40  ;;  %v685_v52 = vmul.f32 0.5, %v677_v39 }
 0x23d   : > { %v1334_v46 = vpop.eup %1333  ;;  %v679_v50 = vadd.f32 1.0, %v1332_v42  ;;  %v684_v61 = vmul.f32 0.5, %v676_v41  ;;  %v691_v3 = vmul.f32 %v683_v49, %v1623_v43 }
 0x23e   : > { %v1336_v51 = vpop.eup %1335  ;;  %v681_v55 = vadd.f32 1.0, %v1334_v46  ;;  %v686_v2 = vmul.f32 0.5, %v678_v45  ;;  %v693_v6 = vmul.f32 %v685_v52, %v1625_v44 }
 0x23f   : > { %v1338_v56 = vpop.eup %1337  ;;  %v687_v57 = vmul.f32 0.5, %v679_v50  ;;  %v680_v58 = vadd.f32 1.0, %v1336_v51  ;;  %v692_v9 = vmul.f32 %v684_v61, %v1627_v47  ;;  %v1151_v47 = vld [vmem:[%s1698_s6] ss:$0 sm:$0xff] }
 0x240   : > { %v689_v62 = vmul.f32 0.5, %v681_v55  ;;  %v682_v63 = vadd.f32 1.0, %v1338_v56  ;;  %v694_v12 = vmul.f32 %v686_v2, %v1629_v48 }
 0x241   : > { %v695_v4 = vmul.f32 %v687_v57, %v1635_v53  ;;  %v688_v5 = vmul.f32 0.5, %v680_v58 }
 0x242   : > { %v697_v7 = vmul.f32 %v689_v62, %v1637_v54  ;;  %v690_v8 = vmul.f32 0.5, %v682_v63 }
 0x243   : > { %v696_v10 = vmul.f32 %v688_v5, %v1643_v59  ;;  %v699_v11 = vpack.c.bf16 %v695_v4, %v691_v3 }
 0x244   : > { %v698_v13 = vmul.f32 %v690_v8, %v1645_v60  ;;  %v701_v14 = vpack.c.bf16 %v697_v7, %v693_v6 }
 0x245   : > { %v700_v15 = vpack.c.bf16 %v696_v10, %v692_v9 }
 0x246   : > { %v702_v43 = vpack.c.bf16 %v698_v13, %v694_v12 }
 0x247   : > { %998 = vmatprep.mubr.bf16.mxu0 %v700_v15 }
 0x248   : > { %1039 = vmatprep.mubr.bf16.mxu1 %v702_v43  ;;  %999 = vmatmul.mubr.bf16.vlgmr.msra.gmra.mrb[4].mxu0 %v699_v11 }
 0x249   : > { %1040 = vmatmul.mubr.bf16.vlgmr.msra.gmra.mrb[4].mxu1 %v701_v14 }
 0x31b   : > { %v1202_v44 = vpop.f32.mrb[4].mxu0 }
 0x31c   : > { %v1224_v53 = vpop.f32.mrb[4].mxu1  ;;  %v1203_v54 = vpop.f32.mrb[5].mxu0 }
 0x31d   : > { %v1204_v59 = vadd.f32 %v1203_v54, %v1202_v44  ;;  %v1225_v16 = vpop.f32.mrb[5].mxu1  ;;  %v1205_v48 = vpop.f32.mrb[6].mxu0 }
 0x31e   : > { %v1226_v17 = vadd.f32 %v1225_v16, %v1224_v53  ;;  %v1227_v60 = vpop.f32.mrb[6].mxu1  ;;  %v1206_v18 = vpop.f32.mrb[7].mxu0 }
 0x31f   : > { %v1001_v19 = vadd.f32 %v1204_v59, %v1151_v47  ;;  %v1207_v20 = vadd.f32 %v1206_v18, %v1205_v48  ;;  %v1228_v21 = vpop.f32.mrb[7].mxu1 }
 0x320   : > { %v1229_v22 = vadd.f32 %v1228_v21, %v1227_v60 }
 0x321   : > { %v1042_v23 = vadd.f32 %v1226_v17, %v1001_v19  ;;  %v1004_v24 = vadd.f32 %v1207_v20, %v1151_v47 }
 0x323   : > { %v1048_v25 = vadd.f32 %v1042_v23, %v1404_v0  ;;  %v1045_v26 = vadd.f32 %v1229_v22, %v1004_v24 }
 0x325   : > { %1050 = vst [vmem:[%s280_s29] sm:$0xff] %v1048_v25  ;;  %v1049_v27 = vadd.f32 %v1045_v26, %v1406_v1 }
 0x327   : > { %1051 = vst [vmem:[%s280_s29 + $0x8] sm:$0xff] %v1049_v27 }
 0x328 PF: > { %s17_s24 = sadd.s32 1, %s1345_s24  }
 0x329   : > { %p14_p4 = scmp.ge.s32.totalorder %s17_s24, 5  }
 0x32b   :  { %16 = sbr.rel (!%p14_p4) target bundleno = 1 (0x1), region = 78 }

</bundles_post_ra>
